<compile_context>
chip_gen: v7x
topology: tpu7x:2x2x1
jax: 0.10.0
libtpu: 0.0.40
codegen_flags: <defaults>
</compile_context>

<pallas_src>
import functools

import jax
import jax.numpy as jnp
from jax.experimental import pallas as pl
from jax.experimental.pallas import tpu as pltpu


def cbow_kernel(ctx_ref, emb_ref, w_ref, b_ref, out_ref, hidden_ref, *,
                num_ctx):
    """One B tile: gather+sum context rows, project to vocab, log_softmax."""
    bt = pl.program_id(0)               # B-tile index
    tb, _ = hidden_ref.shape

    # --- Embedding gather + context sum into the f32 hidden scratch.
    # Rolled loop over the B tile (dynamic row loads from the resident VMEM
    # embedding block; the tiny context loop of size C stays statically
    # unrolled).
    @pl.loop(0, tb)
    def _(i):
        base = (bt * tb + i) * num_ctx          # flat index into SMEM ctx
        acc = emb_ref[pl.ds(ctx_ref[base], 1), :]
        for c in range(1, num_ctx):
            acc = acc + emb_ref[pl.ds(ctx_ref[base + c], 1), :]
        hidden_ref[pl.ds(i, 1), :] = acc

    # --- D -> V projection for the full vocab row (bf16 MXU, f32 accumulate).
    # hidden is cast to bf16 once per B tile (single dot per tile).
    logits = jnp.dot(hidden_ref[...].astype(jnp.bfloat16), w_ref[...],
                     preferred_element_type=jnp.float32) + b_ref[...]

    # --- Fused log_softmax: the whole vocab row is present, so no online LSE
    # or second pass is needed.
    m = jnp.max(logits, axis=-1, keepdims=True)
    l = jnp.sum(jnp.exp(logits - m), axis=-1, keepdims=True)
    out_ref[...] = logits - (m + jnp.log(l))


def cbow_forward(ctx, emb, w_t, bias, *, tb=64):
    """ctx:[B,C] int32, emb:[V,D] f32, w_t:[D,V] (bf16 preferred),
    bias:[1,V] -> log-probs [B,V] f32."""
    B, C = ctx.shape
    V, D = emb.shape
    assert C >= 1
    assert B % tb == 0 and tb % 8 == 0, "B tile must divide B and be 8-aligned"
    assert V % 128 == 0 and D % 128 == 0, "V and D must be lane-aligned"
    nb = B // tb

    ctx_flat = ctx.reshape(-1).astype(jnp.int32)   # 1-D -> cheap SMEM layout
    # Parameters should already be stored in these dtypes (casts below are
    # no-ops in that case).
    w_bf16 = w_t if w_t.dtype == jnp.bfloat16 else w_t.astype(jnp.bfloat16)
    bias_f32 = bias.reshape(1, V).astype(jnp.float32)

    grid_spec = pltpu.PrefetchScalarGridSpec(
        num_scalar_prefetch=1,
        grid=(nb,),
        in_specs=[
            # Embedding table: resident VMEM block (demo-sized vocab).
            pl.BlockSpec((V, D), lambda b, ctx: (0, 0)),
            # Projection weight: resident bf16 block, DMA'd once (not per B
            # tile).
            pl.BlockSpec((D, V), lambda b, ctx: (0, 0)),
            # Bias: resident (1, V) block.
            pl.BlockSpec((1, V), lambda b, ctx: (0, 0)),
        ],
        # Lane-dense full-vocab output tile per B tile.
        out_specs=pl.BlockSpec((tb, V), lambda b, ctx: (b, 0)),
        scratch_shapes=[
            pltpu.VMEM((tb, D), jnp.float32),   # hidden (gathered context sum)
        ],
    )

    return pl.pallas_call(
        functools.partial(cbow_kernel, num_ctx=C),
        out_shape=jax.ShapeDtypeStruct((B, V), jnp.float32),
        grid_spec=grid_spec,
        compiler_params=pltpu.CompilerParams(
            dimension_semantics=("parallel",),
            vmem_limit_bytes=32 * 1024 * 1024),
    )(ctx_flat, emb, w_bf16, bias_f32)


def cbow_reference(ctx, emb, w_bf16, bias):
    """Pure-JAX reference mirroring the kernel's bf16 matmul inputs."""
    hidden = emb[ctx].sum(axis=1)                                  # [B, D] f32
    hidden_bf = hidden.astype(jnp.bfloat16).astype(jnp.float32)
    w_f = w_bf16.astype(jnp.float32)
    logits = hidden_bf @ w_f + bias.astype(jnp.float32)            # [B, V]
    return jax.nn.log_softmax(logits, axis=-1)


if __name__ == "__main__":
    # Small shapes consistent with CBOW, sized so the B tiling is exercised
    # (nb = 2) and V/D are lane-aligned.
    B, C, V, D = 128, 4, 1024, 128   # batch, context size, vocab, embed dim

    key = jax.random.PRNGKey(0)
    k_ctx, k_emb, k_w, k_b = jax.random.split(key, 4)

    ctx = jax.random.randint(k_ctx, (B, C), 0, V, dtype=jnp.int32)
    emb = jax.random.normal(k_emb, (V, D), dtype=jnp.float32) * 0.1
    # Linear weight pre-transposed to (D, V) and stored persistently as bf16
    # (cast once at setup, not per forward call).
    w_bf16 = (jax.random.normal(k_w, (D, V), dtype=jnp.float32) * 0.1
              ).astype(jnp.bfloat16)
    bias = jax.random.normal(k_b, (1, V), dtype=jnp.float32) * 0.1

    out = cbow_forward(ctx, emb, w_bf16, bias)
    out = jax.block_until_ready(out)

    ref = cbow_reference(ctx, emb, w_bf16, bias)
    assert out.shape == (B, V)
    assert bool(jnp.allclose(out, ref, atol=2e-3, rtol=2e-3)), \
        float(jnp.max(jnp.abs(out - ref)))

    print("KERNEL_OK")
</pallas_src>

<mosaic_0001>
module attributes {stable_mosaic.version = 11 : i64} {
  func.func @cbow_kernel(%arg0: i32, %arg1: memref<512xi32, #tpu.memory_space<smem>>, %arg2: memref<1024x128xf32, #tpu.memory_space<vmem>>, %arg3: memref<128x1024xbf16, #tpu.memory_space<vmem>>, %arg4: memref<1x1024xf32, #tpu.memory_space<vmem>>, %arg5: memref<64x1024xf32, #tpu.memory_space<vmem>>, %arg6: memref<64x128xf32, #tpu.memory_space<vmem>>) attributes {dimension_semantics = [#tpu.dimension_semantics<parallel>], iteration_bounds = array<i64: 2>, scalar_prefetch = 1 : i64, scratch_operands = 1 : i64, tpu.core_type = #tpu.core_type<tc>, window_params = [{pipeline_mode = #tpu.pipeline_mode<synchronous>, transform_indices = @transform_0, window_bounds = array<i64: 1024, 128>}, {pipeline_mode = #tpu.pipeline_mode<synchronous>, transform_indices = @transform_1, window_bounds = array<i64: 128, 1024>}, {pipeline_mode = #tpu.pipeline_mode<synchronous>, transform_indices = @transform_2, window_bounds = array<i64: 1, 1024>}, {transform_indices = @transform_3, window_bounds = array<i64: 64, 1024>}]} {
    %c0_i32 = arith.constant 0 : i32
    %c64_i32 = arith.constant 64 : i32
    %0 = arith.addi %c0_i32, %c64_i32 : i32
    %c1_i32 = arith.constant 1 : i32
    scf.for %arg7 = %c0_i32 to %0 step %c1_i32  : i32 {
      %c1_i32_10 = arith.constant 1 : i32
      %20 = arith.muli %arg7, %c1_i32_10 : i32
      %c0_i32_11 = arith.constant 0 : i32
      %21 = arith.addi %c0_i32_11, %20 : i32
      %c64_i32_12 = arith.constant 64 : i32
      %22 = arith.muli %arg0, %c64_i32_12 : i32
      %23 = arith.addi %22, %21 : i32
      %c4_i32 = arith.constant 4 : i32
      %24 = arith.muli %23, %c4_i32 : i32
      %25 = arith.index_cast %24 : i32 to index
      %26 = memref.load %arg1[%25] : memref<512xi32, #tpu.memory_space<smem>>
      %27 = arith.index_cast %26 : i32 to index
      %c0_13 = arith.constant 0 : index
      %28 = vector.load %arg2[%27, %c0_13] : memref<1024x128xf32, #tpu.memory_space<vmem>>, vector<1x128xf32>
      %c1_i32_14 = arith.constant 1 : i32
      %29 = arith.addi %24, %c1_i32_14 : i32
      %30 = arith.index_cast %29 : i32 to index
      %31 = memref.load %arg1[%30] : memref<512xi32, #tpu.memory_space<smem>>
      %32 = arith.index_cast %31 : i32 to index
      %c0_15 = arith.constant 0 : index
      %33 = vector.load %arg2[%32, %c0_15] : memref<1024x128xf32, #tpu.memory_space<vmem>>, vector<1x128xf32>
      %34 = arith.addf %28, %33 : vector<1x128xf32>
      %c2_i32 = arith.constant 2 : i32
      %35 = arith.addi %24, %c2_i32 : i32
      %36 = arith.index_cast %35 : i32 to index
      %37 = memref.load %arg1[%36] : memref<512xi32, #tpu.memory_space<smem>>
      %38 = arith.index_cast %37 : i32 to index
      %c0_16 = arith.constant 0 : index
      %39 = vector.load %arg2[%38, %c0_16] : memref<1024x128xf32, #tpu.memory_space<vmem>>, vector<1x128xf32>
      %40 = arith.addf %34, %39 : vector<1x128xf32>
      %c3_i32 = arith.constant 3 : i32
      %41 = arith.addi %24, %c3_i32 : i32
      %42 = arith.index_cast %41 : i32 to index
      %43 = memref.load %arg1[%42] : memref<512xi32, #tpu.memory_space<smem>>
      %44 = arith.index_cast %43 : i32 to index
      %c0_17 = arith.constant 0 : index
      %45 = vector.load %arg2[%44, %c0_17] : memref<1024x128xf32, #tpu.memory_space<vmem>>, vector<1x128xf32>
      %46 = arith.addf %40, %45 : vector<1x128xf32>
      %47 = arith.index_cast %21 : i32 to index
      %c0_18 = arith.constant 0 : index
      %48 = vector.load %arg6[%47, %c0_18] : memref<64x128xf32, #tpu.memory_space<vmem>>, vector<1x128xf32>
      tpu.vector_store %arg6[%47, %c0_18], %46 {strides = array<i32>} : memref<64x128xf32, #tpu.memory_space<vmem>>, vector<1x128xf32>,
    }
    %c64_i32_0 = arith.constant 64 : i32
    %c0 = arith.constant 0 : index
    %c0_1 = arith.constant 0 : index
    %1 = vector.load %arg6[%c0, %c0_1] : memref<64x128xf32, #tpu.memory_space<vmem>>, vector<64x128xf32>
    %2 = arith.truncf %1 : vector<64x128xf32> to vector<64x128xbf16>
    %c0_2 = arith.constant 0 : index
    %c0_3 = arith.constant 0 : index
    %3 = vector.load %arg3[%c0_2, %c0_3] : memref<128x1024xbf16, #tpu.memory_space<vmem>>, vector<128x1024xbf16>
    %cst = arith.constant dense<0.000000e+00> : vector<64x1024xf32>
    %4 = tpu.matmul %2, %3, %cst {dimension_numbers = #tpu.dot_dimension_numbers<[1], [0], [0], [1], [0, 0, 1, 1], [], []>} : vector<64x128xbf16>, vector<128x1024xbf16>, vector<64x1024xf32> -> vector<64x1024xf32>
    %c0_4 = arith.constant 0 : index
    %c0_5 = arith.constant 0 : index
    %5 = vector.load %arg4[%c0_4, %c0_5] : memref<1x1024xf32, #tpu.memory_space<vmem>>, vector<1x1024xf32>
    %6 = vector.broadcast %5 : vector<1x1024xf32> to vector<64x1024xf32>
    %7 = arith.addf %4, %6 : vector<64x1024xf32>
    %cst_6 = arith.constant dense<0xFF800000> : vector<64xf32>
    %8 = vector.multi_reduction <maximumf>, %7, %cst_6 [1] : vector<64x1024xf32> to vector<64xf32>
    %9 = vector.shape_cast %8 : vector<64xf32> to vector<64x1xf32>
    %10 = vector.broadcast %9 : vector<64x1xf32> to vector<64x1024xf32>
    %11 = arith.subf %7, %10 : vector<64x1024xf32>
    %12 = math.exp %11 : vector<64x1024xf32>
    %cst_7 = arith.constant dense<0.000000e+00> : vector<64xf32>
    %13 = vector.multi_reduction <add>, %12, %cst_7 [1] : vector<64x1024xf32> to vector<64xf32>
    %14 = vector.shape_cast %13 : vector<64xf32> to vector<64x1xf32>
    %15 = math.log %14 : vector<64x1xf32>
    %16 = arith.addf %9, %15 : vector<64x1xf32>
    %17 = vector.broadcast %16 : vector<64x1xf32> to vector<64x1024xf32>
    %18 = arith.subf %7, %17 : vector<64x1024xf32>
    %c0_8 = arith.constant 0 : index
    %c0_9 = arith.constant 0 : index
    %19 = vector.load %arg5[%c0_8, %c0_9] : memref<64x1024xf32, #tpu.memory_space<vmem>>, vector<64x1024xf32>
    tpu.vector_store %arg5[%c0_8, %c0_9], %18 {strides = array<i32>} : memref<64x1024xf32, #tpu.memory_space<vmem>>, vector<64x1024xf32>,
    return
  }
  func.func @transform_0(%arg0: i32, %arg1: memref<512xi32, #tpu.memory_space<smem>>) -> (i32, i32) {
    %c0_i32 = arith.constant 0 : i32
    %c0_i32_0 = arith.constant 0 : i32
    %c0_i32_1 = arith.constant 0 : i32
    return %c0_i32, %c0_i32_0 : i32, i32
  }
  func.func @transform_1(%arg0: i32, %arg1: memref<512xi32, #tpu.memory_space<smem>>) -> (i32, i32) {
    %c0_i32 = arith.constant 0 : i32
    %c0_i32_0 = arith.constant 0 : i32
    %c0_i32_1 = arith.constant 0 : i32
    return %c0_i32, %c0_i32_0 : i32, i32
  }
  func.func @transform_2(%arg0: i32, %arg1: memref<512xi32, #tpu.memory_space<smem>>) -> (i32, i32) {
    %c0_i32 = arith.constant 0 : i32
    %c0_i32_0 = arith.constant 0 : i32
    %c0_i32_1 = arith.constant 0 : i32
    return %c0_i32, %c0_i32_0 : i32, i32
  }
  func.func @transform_3(%arg0: i32, %arg1: memref<512xi32, #tpu.memory_space<smem>>) -> (i32, i32) {
    %c0_i32 = arith.constant 0 : i32
    %c0_i32_0 = arith.constant 0 : i32
    return %arg0, %c0_i32 : i32, i32
  }
}

</mosaic_0001>

<bundles_post_ra>
// kernel: tpu_custom_call.1
= control target key start
LH: loop header
LB: loop body
LE: loop exit
PB: predicated region body
PF: predicated region fallthrough
CT: control target
= control target key end

     0   :  { %s2864_s0 = inlined_call_operand.hbm [shape: s32[512], index: 0, kind: input, shape index: {}]   ;;  %s2865_s1 = inlined_call_operand.hbm [shape: f32[1024,128], index: 1, kind: input, shape index: {}]   ;;  %s2866_s2 = inlined_call_operand.hbm [shape: bf16[128,1024], index: 2, kind: input, shape index: {}]   ;;  %s2867_s3 = inlined_call_operand.vmem [shape: f32[1,1024], index: 3, kind: input, shape index: {}]   ;;  %s2868_s4 = inlined_call_operand.hbm [shape: f32[128,1024], index: 4, kind: output, shape index: {}]  }
   0x1   :  { %s1832_s17 = scalar_lea.hbm %s2864_s0, 64 }
   0x2   :  { %p1833_p0 = scmp.ne.s32.totalorder %s2864_s0, %s1832_s17  ;;  %p1836_p1 = scmp.lt.u32.totalorder %s1832_s17, %s2864_s0 }
   0x4   :  { %p1838_p2 = pnand %p1836_p1, %p1833_p0 }
   0x6   :  { %1841 = shalt.err (!%p1838_p2)  }
   0x7   :  { %s1980_s22 = smov [#allocation4]  }
   0x8   :  { %10 = dma.hbm_to_smem %s2864_s0, 64, %s1980_s22, [#allocation3] }
   0x9   :  { %1946 = dma.done.wait [#allocation3], 64 }
   0xa   :  { %1947 = vsyncadd [#allocation3], 4294967232 }
   0xb   :  { %12 = sfence }
   0xc   :  { %13 = vsyncpa [#allocation6], 0 }
   0xd   :  { %14 = vsyncpa [#allocation9], 0 }
   0xe   :  { %15 = vsyncpa [#allocation7], 0 }
   0xf   :  { %17 = vsyncpa [#allocation7 + $0x1], 0  ;;  %s2028_s25 = smov 0   ;;  %s2030_s26 = smov 0  }
  0x10   :  { %s2032_s27 = smov 0   ;;  %s2034_s28 = smov 0  }
  0x11 LB: > { %s2049_s0 = sadd.s32 4294967295, %s1974_s28   ;;  %s1530_s29 = sadd.s32 4294967294, %s1974_s28   ;;  %s1974_s28 = sphi %s2034_s28, %s3026_s28   ;;  %s1970_s27 = sphi %s2032_s27, %s3025_s27   ;;  %s1966_s26 = sphi %s2030_s26, %s3024_s26   ;;  %s1962_s25 = sphi %s2028_s25, %s3023_s25  }
  0x12   : > { %s2053_s30 = sadd.s32 1, %s1974_s28   ;;  %s93_s5 = sadd.s32 1, %s1970_s27 }
  0x13   : > { %s90_s6 = ssub.s32 %s1974_s28, %s2053_s30  ;;  %p103_p3 = scmp.ne.s32.totalorder %s1970_s27, %s1966_s26 }
  0x14   : > { %p91_p4 = scmp.eq.s32.totalorder %s90_s6, 0  ;;  %p104_p5 = scmp.eq.s32.totalorder %s2049_s0, 1 }
  0x15   : > { %p109_p6 = scmp.ne.s32.totalorder %s1966_s26, %s1962_s25  ;;  %p110_p7 = scmp.eq.s32.totalorder %s1530_s29, 1 }
  0x16   : > { %s2064_s7 = scalar_select %p91_p4, %s1970_s27, %s93_s5  }
  0x17   : > { %p2066_p8 = por %p104_p5, %p103_p3  ;;  %p2070_p9 = por %p110_p7, %p109_p6 }
  0x18   : > { %p1531_p10 = scmp.ge.s32.totalorder %s1974_s28, 1  ;;  %p117_p11 = scmp.lt.s32.totalorder %s1974_s28, 3 }
  0x19   : > { %s2925_s8 = scalar_select %p2066_p8, 1, 0 }
  0x1a   : > { %s2926_s9 = scalar_select %p2070_p9, 1, 0 }
  0x1b   : > { %p2869_p12 = scmp.eq.s32.totalorder %s2049_s0, 0  ;;  %p2077_p13 = pnand %p1531_p10, %p117_p11 }
  0x1c   : > { %s1981_s11 = smov [#allocation5]   ;;  %s1982_s14 = smov [#allocation8]  }
  0x1d   : > { %s2927_s10 = scalar_select %p2077_p13, 1, 0 }
  0x1e   : > { %s129_s12 = sshll.u32 %s1981_s11, 4  ;;  %p1622_p0 = pneg %p2077_p13  ;;  %s130_s12 = int_to_ptr.vmem [resolvable:$true] %s129_s12 }
  0x1f   : > { %s142_s15 = sshll.u32 %s1982_s14, 4  ;;  %s1842_s18 = scalar_lea.hbm %s2865_s1, 16384  ;;  %s2089_s15 = int_to_ptr.vmem [resolvable:$true] %s142_s15 }
  0x20   : > { %p2085_p1 = pnand %p2869_p12, %p1622_p0  ;;  %p1843_p2 = scmp.ne.s32.totalorder %s2865_s1, %s1842_s18 }
  0x21   : > { %p1849_p6 = scmp.lt.u32.totalorder %s1842_s18, %s2865_s1 }
  0x22   : > { %p1844_p3 = pneg %p2085_p1 }
  0x24   : > { %p1845_p4 = pnand %p1844_p3, %p1843_p2 }
  0x26   : > { %p1846_p5 = pneg %p1845_p4 }
  0x28   : > { %p1851_p7 = pnand %p1849_p6, %p1846_p5 }
  0x2a   : > { %1854 = shalt.err (!%p1851_p7)
}
  0x2b   : > { %s1855_s23 = scalar_lea.vmem %s130_s12, 16384  ;;  %p1863_p12 = scmp.lt.s32.totalorder %s130_s12, %s130_s12 }
  0x2c   : > { %p1856_p10 = scmp.ne.s32.totalorder %s130_s12, %s1855_s23  ;;  %p1864_p9 = scmp.lt.s32.totalorder %s1855_s23, %s1855_s23 }
  0x2e   : > { %p1858_p11 = pnand %p1856_p10, %p1844_p3  ;;  %p1865_p8 = por %p1864_p9, %p1863_p12 }
  0x30   : > { %p1859_p0 = pneg %p1858_p11 }
  0x32   : > { %p1866_p13 = pnand %p1865_p8, %p1859_p0 }
  0x34   : > { %1869 = shalt.err (!%p1866_p13)
}
  0x35   : > { %s1983_s24 = smov 128   ;;  %s1984_s29 = smov 8  }
  0x36   : > { %1625 = dma.hbm_to_vmem [thread:$0]  (!%p2085_p1), %s2865_s1, 16384, %s130_s12, [#allocation6], %s1983_s24, %s1983_s24, %s1984_s29  }
  0x37   : > { %s1870_s16 = scalar_lea.hbm %s2866_s2, 8192 }
  0x38   : > { %p1871_p2 = scmp.ne.s32.totalorder %s2866_s2, %s1870_s16  ;;  %p1877_p12 = scmp.lt.u32.totalorder %s1870_s16, %s2866_s2 }
  0x3a   : > { %p1873_p8 = pnand %p1871_p2, %p1844_p3 }
  0x3c   : > { %p1874_p9 = pneg %p1873_p8 }
  0x3e   : > { %p1879_p13 = pnand %p1877_p12, %p1874_p9 }
  0x40   : > { %1882 = shalt.err (!%p1879_p13)
}
  0x41   : > { %s1883_s12 = scalar_lea.vmem %s2089_s15, 8192  ;;  %p1891_p7 = scmp.lt.s32.totalorder %s2089_s15, %s2089_s15 }
  0x42   : > { %p1884_p4 = scmp.ne.s32.totalorder %s2089_s15, %s1883_s12  ;;  %p1892_p10 = scmp.lt.s32.totalorder %s1883_s12, %s1883_s12 }
  0x44   : > { %p1886_p5 = pnand %p1884_p4, %p1844_p3  ;;  %p1893_p11 = por %p1892_p10, %p1891_p7 }
  0x46   : > { %p1887_p6 = pneg %p1886_p5 }
  0x48   : > { %p1894_p0 = pnand %p1893_p11, %p1887_p6 }
  0x4a   : > { %1897 = shalt.err (!%p1894_p0)
}
  0x4b   : > { %s1985_s21 = smov 512   ;;  %s1986_s22 = smov 32  }
  0x4c   : > { %1628 = dma.hbm_to_vmem [thread:$0]  (!%p2085_p1), %s2866_s2, 8192, %s2089_s15, [#allocation9], %s1985_s21, %s1985_s21, %s1986_s22  }
  0x4d   : > { %p2929_p2 = scmp.ne.s32.totalorder %s2927_s10, 0 }
  0x4f   : > { %161 = sbr.rel (%p2929_p2) target bundleno = 791 (0x317), region = 32 }
  0x56   : > { %p2930_p3 = scmp.eq.s32.totalorder %s2049_s0, 0 }
  0x58   : > { %1949 = dma.done.wait (%p2930_p3), [#allocation6], 16384   ;;  %p2931_p8 = pmov %p2930_p3 }
  0x59   : > { %p2932_p9 = pmov %p2930_p3 }
  0x5a   : > { %1951 = vsyncadd (%p2931_p8), [#allocation6], 4294950912 }
  0x5b   : > { %1953 = dma.done.wait (%p2932_p9), [#allocation9], 8192   ;;  %p2933_p12 = pmov %p2930_p3 }
  0x5c   : > { %s181_s13 = sand.u32 1, %s1966_s26   ;;  %s2153_s10 = smov 0  }
  0x5d   : > { %1955 = vsyncadd (%p2933_p12), [#allocation9], 4294959104  ;;  %s1537_s15 = sshll.u32 %s181_s13, 9 }
  0x5e   : > { %s2151_s29 = scalar_lea.vmem [#allocation10], %s1537_s15 }
  0x5f LB: >> { %s1538_s5 = sshll.u32 %s2049_s0, 6  ;;  %s213_s15 = scalar_lea.vmem [#allocation2], %s1978_s10  ;;  %s1978_s10 = sphi %s2153_s10, %s191_s10  }
  0x60   : >> { %s193_s6 = sadd.s32 %s1978_s10, %s1538_s5  ;;  %s191_s10 = sadd.s32 1, %s1978_s10  }
  0x61   : >> { %s1539_s11 = sshll.u32 %s193_s6, 2  ;;  %p188_p1 = scmp.ge.s32.totalorder %s191_s10, 64  }
  0x62   : >> { %s195_s14 = sld [smem:[#allocation4 + %s1539_s11]]  ;;  %s198_s16 = sadd.s32 1, %s1539_s11  ;;  %v227_v7 = vld [vmem:[#allocation8] sm:$0xff] (%p188_p1)  ;;  %v228_v9 = vld [vmem:[#allocation8 + $0x8] sm:$0xff] (%p188_p1)  ;;  %v1987_v15 = vmov (%p188_p1), 0  }
  0x63   : >> { %s199_s17 = sld [smem:[#allocation4 + %s198_s16]]  ;;  %s203_s18 = sadd.s32 2, %s1539_s11  ;;  %v231_v8 = vld [vmem:[#allocation8 + $0x20] sm:$0xff] (%p188_p1)  ;;  %v232_v12 = vld [vmem:[#allocation8 + $0x28] sm:$0xff] (%p188_p1)  ;;  %685 = vmatprep.mubr.bf16.mxu0 (%p188_p1), %v1987_v15  ;;  %758 = vmatprep.mubr.bf16.mxu1 (%p188_p1), %v1987_v15 }
  0x64   : >> { %s204_s19 = sld [smem:[#allocation4 + %s203_s18]]  ;;  %s208_s20 = sadd.s32 3, %s1539_s11  ;;  %v1541_v10 = vcombine.high (%p188_p1), %v227_v7, %v231_v8  ;;  %v1540_v11 = vcombine.low (%p188_p1), %v227_v7, %v231_v8  ;;  %v235_v13 = vld [vmem:[#allocation8 + $0x40] sm:$0xff] (%p188_p1)  ;;  %v1543_v16 = vcombine.high (%p188_p1), %v228_v9, %v232_v12  ;;  %v1542_v17 = vcombine.low (%p188_p1), %v228_v9, %v232_v12  ;;  %v236_v19 = vld [vmem:[#allocation8 + $0x48] sm:$0xff] (%p188_p1)  ;;  %v233_v7 = vld [vmem:[#allocation8 + $0x30] sm:$0xff] (%p188_p1) }
  0x65   : >> { %s209_s12 = sld [smem:[#allocation4 + %s208_s20]]  ;;  %v239_v14 = vld [vmem:[#allocation8 + $0x60] sm:$0xff] (%p188_p1)  ;;  %v240_v20 = vld [vmem:[#allocation8 + $0x68] sm:$0xff] (%p188_p1)  ;;  %v230_v8 = vld [vmem:[#allocation8 + $0x18] sm:$0xff] (%p188_p1)  ;;  %s1611_s6 = sshll.u32 (%p188_p1), %s2049_s0, 13 }
  0x66   : > { %v1549_v18 = vcombine.high (%p188_p1), %v235_v13, %v239_v14  ;;  %v243_v21 = vld [vmem:[#allocation8 + $0x80] sm:$0xff] (%p188_p1)  ;;  %653 = vmatprep.subr.bf16.mxu0 (%p188_p1), %v1541_v10  ;;  %v1551_v22 = vcombine.high (%p188_p1), %v236_v19, %v240_v20  ;;  %v244_v24 = vld [vmem:[#allocation8 + $0x88] sm:$0xff] (%p188_p1)  ;;  %726 = vmatprep.subr.bf16.mxu1 (%p188_p1), %v1543_v16  ;;  %v1548_v26 = vcombine.low (%p188_p1), %v235_v13, %v239_v14  ;;  %v234_v9 = vld [vmem:[#allocation8 + $0x38] sm:$0xff] (%p188_p1)  ;;  %s1448_s11 = sshll.u32 (%p188_p1), %s2151_s29, 4  ;;  %s2805_s0 = scalar_lea.hbm (%p188_p1), %s2868_s4, %s1611_s6  ;;  %s2807_s11 = int_to_ptr.vmem [resolvable:$true] %s1448_s11 }
  0x67   : > { %v247_v23 = vld [vmem:[#allocation8 + $0xa0] sm:$0xff] (%p188_p1)  ;;  %v248_v25 = vld [vmem:[#allocation8 + $0xa8] sm:$0xff] (%p188_p1)  ;;  %654 = vmatpush1.bf16.msra.mxu0 (%p188_p1), %v1540_v11  ;;  %727 = vmatpush1.bf16.msra.mxu1 (%p188_p1), %v1542_v17  ;;  %v1550_v27 = vcombine.low (%p188_p1), %v236_v19, %v240_v20  ;;  %v1547_v16 = vcombine.high (%p188_p1), %v230_v8, %v234_v9  ;;  %v237_v17 = vld [vmem:[#allocation8 + $0x50] sm:$0xff] (%p188_p1)  ;;  %s1898_s18 = scalar_lea.vmem (%p188_p1), %s2807_s11, 8192  ;;  %p3021_p4 = scmp.ne.s32.totalorder (%p188_p1), %s2925_s8, 0 }
  0x68   : >> { %s196_s21 = scalar_lea.vmem [#allocation5], %s195_s14  ;;  %655 = vmatprep.subr.bf16.mxu0 (%p188_p1), %v1549_v18  ;;  %v1557_v28 = vcombine.high (%p188_p1), %v243_v21, %v247_v23  ;;  %728 = vmatprep.subr.bf16.mxu1 (%p188_p1), %v1551_v22  ;;  %v1559_v29 = vcombine.high (%p188_p1), %v244_v24, %v248_v25  ;;  %v251_v30 = vld [vmem:[#allocation8 + $0xc0] sm:$0xff] (%p188_p1)  ;;  %v252_v32 = vld [vmem:[#allocation8 + $0xc8] sm:$0xff] (%p188_p1)  ;;  %v1556_v34 = vcombine.low (%p188_p1), %v243_v21, %v247_v23  ;;  %v241_v18 = vld [vmem:[#allocation8 + $0x70] sm:$0xff] (%p188_p1)  ;;  %p1899_p13 = scmp.ne.s32.totalorder (%p188_p1), %s2807_s11, %s1898_s18 }
  0x69   : >> { %v197_v0 = vld [vmem:[%s196_s21] sm:$0x1]  ;;  %s200_s22 = scalar_lea.vmem [#allocation5], %s199_s17  ;;  %v255_v31 = vld [vmem:[#allocation8 + $0xe0] sm:$0xff] (%p188_p1)  ;;  %v256_v33 = vld [vmem:[#allocation8 + $0xe8] sm:$0xff] (%p188_p1)  ;;  %v1558_v35 = vcombine.low (%p188_p1), %v244_v24, %v248_v25  ;;  %v1546_v23 = vcombine.low (%p188_p1), %v230_v8, %v234_v9  ;;  %v1553_v24 = vcombine.high (%p188_p1), %v237_v17, %v241_v18  ;;  %s2823_s17 = scalar_lea.sflag (%p188_p1), [#allocation7], %s181_s13 }
  0x6a   : >> { %v201_v1 = vld [vmem:[%s200_s22] sm:$0x1]  ;;  %s205_s23 = scalar_lea.vmem [#allocation5], %s204_s19  ;;  %v1565_v36 = vcombine.high (%p188_p1), %v251_v30, %v255_v31  ;;  %v1567_v37 = vcombine.high (%p188_p1), %v252_v32, %v256_v33  ;;  %v259_v38 = vld [vmem:[#allocation8 + $0x100] sm:$0xff] (%p188_p1)  ;;  %v260_v40 = vld [vmem:[#allocation8 + $0x108] sm:$0xff] (%p188_p1)  ;;  %v1564_v42 = vcombine.low (%p188_p1), %v251_v30, %v255_v31  ;;  %v1566_v43 = vcombine.low (%p188_p1), %v252_v32, %v256_v33  ;;  %p1900_p5 = pnand (%p188_p1), %p1899_p13, %p3021_p4 }
  0x6b   : >> { %v202_v2 = vadd.f32 %v201_v1, %v197_v0  ;;  %v206_v3 = vld [vmem:[%s205_s23] sm:$0x1]  ;;  %s210_s24 = scalar_lea.vmem [#allocation5], %s209_s12  ;;  %190 = sbr.rel (!%p188_p1) target bundleno = 95 (0x5f), region = 85  ;;  %656 = vmatpush1.bf16.msra.mxu0 (%p188_p1), %v1548_v26  ;;  %729 = vmatpush1.bf16.msra.mxu1 (%p188_p1), %v1550_v27  ;;  %v263_v39 = vld [vmem:[#allocation8 + $0x120] sm:$0xff] (%p188_p1)  ;;  %v264_v41 = vld [vmem:[#allocation8 + $0x128] sm:$0xff] (%p188_p1)  ;;  %v1552_v30 = vcombine.low (%p188_p1), %v237_v17, %v241_v18 }
  0x6c   : >> { %v211_v4 = vld [vmem:[%s210_s24] sm:$0x1]  ;;  %657 = vmatprep.subr.bf16.mxu0 (%p188_p1), %v1557_v28  ;;  %730 = vmatprep.subr.bf16.mxu1 (%p188_p1), %v1559_v29  ;;  %v1573_v44 = vcombine.high (%p188_p1), %v259_v38, %v263_v39  ;;  %v1575_v45 = vcombine.high (%p188_p1), %v260_v40, %v264_v41  ;;  %v267_v46 = vld [vmem:[#allocation8 + $0x140] sm:$0xff] (%p188_p1)  ;;  %v268_v48 = vld [vmem:[#allocation8 + $0x148] sm:$0xff] (%p188_p1)  ;;  %v1572_v50 = vcombine.low (%p188_p1), %v259_v38, %v263_v39  ;;  %p1901_p6 = pneg (%p188_p1), %p1900_p5  ;;  %s1988_s19 = smov (%p188_p1), [#allocation10]  }
  0x6d   : >> { %v207_v5 = vadd.f32 %v206_v3, %v202_v2  ;;  %v271_v47 = vld [vmem:[#allocation8 + $0x160] sm:$0xff] (%p188_p1)  ;;  %v272_v49 = vld [vmem:[#allocation8 + $0x168] sm:$0xff] (%p188_p1)  ;;  %v1574_v51 = vcombine.low (%p188_p1), %v260_v40, %v264_v41  ;;  %v238_v20 = vld [vmem:[#allocation8 + $0x58] sm:$0xff] (%p188_p1)  ;;  %s1902_s20 = sshll.u32 (%p188_p1), %s1988_s19, 4  ;;  %s1903_s20 = int_to_ptr.vmem [resolvable:$false] %s1902_s20 }
  0x6e   : > { %v1581_v52 = vcombine.high (%p188_p1), %v267_v46, %v271_v47  ;;  %v1583_v53 = vcombine.high (%p188_p1), %v268_v48, %v272_v49  ;;  %v275_v54 = vld [vmem:[#allocation8 + $0x180] sm:$0xff] (%p188_p1)  ;;  %v276_v56 = vld [vmem:[#allocation8 + $0x188] sm:$0xff] (%p188_p1)  ;;  %v1580_v58 = vcombine.low (%p188_p1), %v267_v46, %v271_v47  ;;  %v1582_v59 = vcombine.low (%p188_p1), %v268_v48, %v272_v49  ;;  %v242_v21 = vld [vmem:[#allocation8 + $0x78] sm:$0xff] (%p188_p1)  ;;  %s1904_s12 = scalar_lea.vmem (%p188_p1), %s1903_s20, 16384  ;;  %p1905_p7 = scmp.lt.s32.totalorder (%p188_p1), %s2807_s11, %s1903_s20 }
  0x6f   : >> { %v212_v6 = vadd.f32 %v211_v4, %v207_v5  ;;  %658 = vmatpush1.bf16.msra.mxu0 (%p188_p1), %v1556_v34  ;;  %731 = vmatpush1.bf16.msra.mxu1 (%p188_p1), %v1558_v35  ;;  %v279_v55 = vld [vmem:[#allocation8 + $0x1a0] sm:$0xff] (%p188_p1)  ;;  %v280_v57 = vld [vmem:[#allocation8 + $0x1a8] sm:$0xff] (%p188_p1)  ;;  %v1555_v25 = vcombine.high (%p188_p1), %v238_v20, %v242_v21  ;;  %v245_v26 = vld [vmem:[#allocation8 + $0x90] sm:$0xff] (%p188_p1)  ;;  %v1554_v33 = vcombine.low (%p188_p1), %v238_v20, %v242_v21  ;;  %p1906_p10 = scmp.lt.s32.totalorder (%p188_p1), %s1904_s12, %s1898_s18 }
  0x70   : > { %659 = vmatprep.subr.bf16.mxu0 (%p188_p1), %v1565_v36  ;;  %732 = vmatprep.subr.bf16.mxu1 (%p188_p1), %v1567_v37  ;;  %v1589_v60 = vcombine.high (%p188_p1), %v275_v54, %v279_v55  ;;  %v1591_v61 = vcombine.high (%p188_p1), %v276_v56, %v280_v57  ;;  %v283_v62 = vld [vmem:[#allocation8 + $0x1c0] sm:$0xff] (%p188_p1)  ;;  %v284_v0 = vld [vmem:[#allocation8 + $0x1c8] sm:$0xff] (%p188_p1)  ;;  %v1588_v2 = vcombine.low (%p188_p1), %v275_v54, %v279_v55  ;;  %v249_v27 = vld [vmem:[#allocation8 + $0xb0] sm:$0xff] (%p188_p1) }
  0x71   : >> { %214 = vst [vmem:[%s213_s15] sm:$0x1] %v212_v6  ;;  %v287_v63 = vld [vmem:[#allocation8 + $0x1e0] sm:$0xff] (%p188_p1)  ;;  %v288_v1 = vld [vmem:[#allocation8 + $0x1e8] sm:$0xff] (%p188_p1)  ;;  %v1590_v3 = vcombine.low (%p188_p1), %v276_v56, %v280_v57  ;;  %v229_v6 = vld [vmem:[#allocation8 + $0x10] sm:$0xff] (%p188_p1)  ;;  %v1561_v34 = vcombine.high (%p188_p1), %v245_v26, %v249_v27  ;;  %v1560_v41 = vcombine.low (%p188_p1), %v245_v26, %v249_v27  ;;  %p1907_p11 = por (%p188_p1), %p1906_p10, %p1905_p7 }
  0x72   : > { %v1597_v4 = vcombine.high %v283_v62, %v287_v63  ;;  %v1599_v5 = vcombine.high %v284_v0, %v288_v1  ;;  %v1596_v10 = vcombine.low %v283_v62, %v287_v63  ;;  %v1598_v13 = vcombine.low %v284_v0, %v288_v1  ;;  %v246_v28 = vld [vmem:[#allocation8 + $0x98] sm:$0xff]  ;;  %v253_v36 = vld [vmem:[#allocation8 + $0xd0] sm:$0xff] }
  0x73   : > { %660 = vmatpush1.bf16.msra.mxu0 %v1564_v42  ;;  %733 = vmatpush1.bf16.msra.mxu1 %v1566_v43  ;;  %v1545_v14 = vcombine.high %v229_v6, %v233_v7  ;;  %v1544_v22 = vcombine.low %v229_v6, %v233_v7  ;;  %v250_v29 = vld [vmem:[#allocation8 + $0xb8] sm:$0xff]  ;;  %v257_v37 = vld [vmem:[#allocation8 + $0xf0] sm:$0xff]  ;;  %p1908_p0 = pnand %p1907_p11, %p1901_p6 }
  0x74   : > { %661 = vmatprep.subr.bf16.mxu0 %v1573_v44  ;;  %734 = vmatprep.subr.bf16.mxu1 %v1575_v45  ;;  %v1563_v35 = vcombine.high %v246_v28, %v250_v29  ;;  %v254_v39 = vld [vmem:[#allocation8 + $0xd8] sm:$0xff]  ;;  %v1562_v42 = vcombine.low %v246_v28, %v250_v29  ;;  %v1569_v43 = vcombine.high %v253_v36, %v257_v37  ;;  %v261_v45 = vld [vmem:[#allocation8 + $0x110] sm:$0xff] }
  0x75   : > { %v258_v40 = vld [vmem:[#allocation8 + $0xf8] sm:$0xff]  ;;  %v265_v46 = vld [vmem:[#allocation8 + $0x130] sm:$0xff]  ;;  %v1568_v49 = vcombine.low %v253_v36, %v257_v37 }
  0x76   : > { %v1571_v44 = vcombine.high %v254_v39, %v258_v40  ;;  %v262_v47 = vld [vmem:[#allocation8 + $0x118] sm:$0xff]  ;;  %v269_v55 = vld [vmem:[#allocation8 + $0x150] sm:$0xff] }
  0x77   : > { %662 = vmatpush1.bf16.msra.mxu0 %v1572_v50  ;;  %735 = vmatpush1.bf16.msra.mxu1 %v1574_v51  ;;  %v266_v48 = vld [vmem:[#allocation8 + $0x138] sm:$0xff]  ;;  %v273_v56 = vld [vmem:[#allocation8 + $0x170] sm:$0xff] }
  0x78   : > { %663 = vmatprep.subr.bf16.mxu0 %v1581_v52  ;;  %736 = vmatprep.subr.bf16.mxu1 %v1583_v53  ;;  %v215_v11 = vld [vmem:[#allocation2] sm:$0xff]  ;;  %v216_v12 = vld [vmem:[#allocation2 + $0x8] sm:$0xff]  ;;  %v217_v31 = vld [vmem:[#allocation2 + $0x10] sm:$0xff]  ;;  %v1570_v52 = vcombine.low %v254_v39, %v258_v40  ;;  %v1577_v53 = vcombine.high %v261_v45, %v265_v46  ;;  %v1579_v54 = vcombine.high %v262_v47, %v266_v48 }
  0x79   : > { %v2161_v19 = vpack.c.bf16 %v216_v12, %v215_v11  ;;  %v218_v32 = vld [vmem:[#allocation2 + $0x18] sm:$0xff]  ;;  %v219_v50 = vld [vmem:[#allocation2 + $0x20] sm:$0xff]  ;;  %v220_v51 = vld [vmem:[#allocation2 + $0x28] sm:$0xff]  ;;  %v1585_v62 = vcombine.high %v269_v55, %v273_v56 }
  0x7a   : > { %v2166_v38 = vpack.c.bf16 %v218_v32, %v217_v31  ;;  %v2172_v57 = vpack.c.bf16 %v220_v51, %v219_v50  ;;  %v277_v0 = vld [vmem:[#allocation8 + $0x190] sm:$0xff]  ;;  %v222_v6 = vld [vmem:[#allocation2 + $0x38] sm:$0xff] }
  0x7b   : > { %664 = vmatpush1.bf16.msra.mxu0 %v1580_v58  ;;  %737 = vmatpush1.bf16.msra.mxu1 %v1582_v59  ;;  %v270_v58 = vld [vmem:[#allocation8 + $0x158] sm:$0xff]  ;;  %v281_v1 = vld [vmem:[#allocation8 + $0x1b0] sm:$0xff] }
  0x7c   : > { %665 = vmatprep.subr.bf16.mxu0 %v1589_v60  ;;  %738 = vmatprep.subr.bf16.mxu1 %v1591_v61  ;;  %v274_v59 = vld [vmem:[#allocation8 + $0x178] sm:$0xff]  ;;  %v1576_v60 = vcombine.low %v261_v45, %v265_v46  ;;  %v1578_v61 = vcombine.low %v262_v47, %v266_v48  ;;  %v1593_v8 = vcombine.high %v277_v0, %v281_v1  ;;  %v289_v11 = vld [vmem:[#allocation8 + $0x1f0] sm:$0xff] }
  0x7d   : > { %v1587_v63 = vcombine.high %v270_v58, %v274_v59  ;;  %v1586_v7 = vcombine.low %v270_v58, %v274_v59 }
  0x7f   : > { %666 = vmatpush1.bf16.msra.mxu0 %v1588_v2  ;;  %739 = vmatpush1.bf16.msra.mxu1 %v1590_v3  ;;  %v278_v2 = vld [vmem:[#allocation8 + $0x198] sm:$0xff] }
  0x80   : > { %667 = vmatprep.subr.bf16.mxu0 %v1597_v4  ;;  %740 = vmatprep.subr.bf16.mxu1 %v1599_v5  ;;  %v282_v3 = vld [vmem:[#allocation8 + $0x1b8] sm:$0xff]  ;;  %v1584_v4 = vcombine.low %v269_v55, %v273_v56  ;;  %v221_v5 = vld [vmem:[#allocation2 + $0x30] sm:$0xff] }
  0x81   : > { %v1595_v9 = vcombine.high %v278_v2, %v282_v3  ;;  %v226_v12 = vpack.c.bf16 %v222_v6, %v221_v5  ;;  %v1594_v17 = vcombine.low %v278_v2, %v282_v3 }
  0x83   : > { %668 = vmatpush1.bf16.msra.mxu0 %v1596_v10  ;;  %741 = vmatpush1.bf16.msra.mxu1 %v1598_v13  ;;  %v285_v10 = vld [vmem:[#allocation8 + $0x1d0] sm:$0xff]  ;;  %v286_v13 = vld [vmem:[#allocation8 + $0x1d8] sm:$0xff] }
  0x84   : > { %799 = vmatprep.subr.bf16.mxu0 %v1545_v14  ;;  %872 = vmatprep.subr.bf16.mxu1 %v1547_v16  ;;  %v290_v14 = vld [vmem:[#allocation8 + $0x1f8] sm:$0xff]  ;;  %v1592_v16 = vcombine.low %v277_v0, %v281_v1  ;;  %v1601_v18 = vcombine.high %v285_v10, %v289_v11  ;;  %v1600_v21 = vcombine.low %v285_v10, %v289_v11 }
  0x85   : > { %v1603_v20 = vcombine.high %v286_v13, %v290_v14 }
  0x86   : > { %686 = vmatmul.mubr.bf16.vlgmr.msra.gmra.mrb[0].mxu0 %v2161_v19  ;;  %759 = vmatmul.mubr.bf16.vlgmr.msra.gmra.mrb[0].mxu1 %v2161_v19 }
  0x87   : > { %800 = vmatpush1.bf16.msra.mxu0 %v1544_v22  ;;  %873 = vmatpush1.bf16.msra.mxu1 %v1546_v23  ;;  %v1602_v22 = vcombine.low %v286_v13, %v290_v14 }
  0x88   : > { %801 = vmatprep.subr.bf16.mxu0 %v1553_v24  ;;  %874 = vmatprep.subr.bf16.mxu1 %v1555_v25 }
  0x89   : > { %695 = vmatprep.mubr.bf16.mxu0 %v1987_v15  ;;  %768 = vmatprep.mubr.bf16.mxu1 %v1987_v15 }
  0x8b   : > { %802 = vmatpush1.bf16.msra.mxu0 %v1552_v30  ;;  %875 = vmatpush1.bf16.msra.mxu1 %v1554_v33  ;;  %v293_v30 = vlaneseq }
  0x8c   : > { %803 = vmatprep.subr.bf16.mxu0 %v1561_v34  ;;  %876 = vmatprep.subr.bf16.mxu1 %v1563_v35 }
  0x8d   : > { %v2193_v32 = vshrl.u32 %v293_v30, 7 }
  0x8e   : > { %696 = vmatmul.mubr.bf16.gmra.mrb[4].mxu0 %v2166_v38  ;;  %769 = vmatmul.mubr.bf16.gmra.mrb[4].mxu1 %v2166_v38 }
  0x8f   : > { %804 = vmatpush1.bf16.msra.mxu0 %v1560_v41  ;;  %877 = vmatpush1.bf16.msra.mxu1 %v1562_v42  ;;  %v295_v39 = vsub.s32 0, %v2193_v32  ;;  %v299_v40 = vsub.s32 1, %v2193_v32  ;;  %v291_v41 = vld [vmem:[%s2867_s3] sm:$0xff]  ;;  %v303_v45 = vsub.s32 2, %v2193_v32  ;;  %v307_v56 = vsub.s32 3, %v2193_v32 }
  0x90   : > { %805 = vmatprep.subr.bf16.mxu0 %v1569_v43  ;;  %878 = vmatprep.subr.bf16.mxu1 %v1571_v44  ;;  %v311_v1 = vsub.s32 4, %v2193_v32 }
  0x91   : > { %705 = vmatprep.mubr.bf16.mxu0 %v1987_v15  ;;  %778 = vmatprep.mubr.bf16.mxu1 %v1987_v15  ;;  %v2206_v43 = vrot.slane %v291_v41, %v295_v39  ;;  %v2208_v44 = vrot.slane %v291_v41, %v299_v40  ;;  %v2231_v55 = vrot.slane %v291_v41, %v303_v45 }
  0x93   : > { %806 = vmatpush1.bf16.msra.mxu0 %v1568_v49  ;;  %879 = vmatpush1.bf16.msra.mxu1 %v1570_v52 }
  0x94   : > { %807 = vmatprep.subr.bf16.mxu0 %v1577_v53  ;;  %880 = vmatprep.subr.bf16.mxu1 %v1579_v54 }
  0x96   : > { %706 = vmatmul.mubr.bf16.gmra.mrb[8].mxu0 %v2172_v57  ;;  %779 = vmatmul.mubr.bf16.gmra.mrb[8].mxu1 %v2172_v57 }
  0x97   : > { %808 = vmatpush1.bf16.msra.mxu0 %v1576_v60  ;;  %881 = vmatpush1.bf16.msra.mxu1 %v1578_v61 }
  0x98   : > { %809 = vmatprep.subr.bf16.mxu0 %v1585_v62  ;;  %882 = vmatprep.subr.bf16.mxu1 %v1587_v63  ;;  %v2247_v62 = vrot.slane %v291_v41, %v307_v56 }
  0x99   : > { %715 = vmatprep.mubr.bf16.mxu0 %v1987_v15  ;;  %788 = vmatprep.mubr.bf16.mxu1 %v1987_v15 }
  0x9b   : > { %810 = vmatpush1.bf16.msra.mxu0 %v1584_v4  ;;  %883 = vmatpush1.bf16.msra.mxu1 %v1586_v7  ;;  %v315_v4 = vsub.s32 5, %v2193_v32 }
  0x9c   : > { %811 = vmatprep.subr.bf16.mxu0 %v1593_v8  ;;  %884 = vmatprep.subr.bf16.mxu1 %v1595_v9  ;;  %v319_v9 = vsub.s32 6, %v2193_v32 }
  0x9e   : > { %716 = vmatmul.mubr.bf16.gmra.mrb[12].mxu0 %v226_v12  ;;  %789 = vmatmul.mubr.bf16.gmra.mrb[12].mxu1 %v226_v12 }
  0x9f   : > { %812 = vmatpush1.bf16.msra.mxu0 %v1592_v16  ;;  %885 = vmatpush1.bf16.msra.mxu1 %v1594_v17  ;;  %v2281_v16 = vrot.slane %v291_v41, %v311_v1 }
  0xa0   : > { %813 = vmatprep.subr.bf16.mxu0 %v1601_v18  ;;  %886 = vmatprep.subr.bf16.mxu1 %v1603_v20  ;;  %v2289_v20 = vrot.slane %v291_v41, %v315_v4 }
  0xa1   : > { %831 = vmatprep.mubr.bf16.mxu0 %v1987_v15  ;;  %904 = vmatprep.mubr.bf16.mxu1 %v1987_v15 }
  0xa3   : > { %814 = vmatpush1.bf16.msra.mxu0 %v1600_v21  ;;  %887 = vmatpush1.bf16.msra.mxu1 %v1602_v22  ;;  %v323_v21 = vsub.s32 7, %v2193_v32 }
  0xa6   : > { %832 = vmatmul.mubr.bf16.vlgmr.msra.gmra.mrb[16].mxu0 %v2161_v19  ;;  %905 = vmatmul.mubr.bf16.vlgmr.msra.gmra.mrb[16].mxu1 %v2161_v19 }
  0xa7   : > { %841 = vmatprep.mubr.bf16.mxu0 %v1987_v15  ;;  %914 = vmatprep.mubr.bf16.mxu1 %v1987_v15 }
  0xae   : > { %842 = vmatmul.mubr.bf16.gmra.mrb[20].mxu0 %v2166_v38  ;;  %915 = vmatmul.mubr.bf16.gmra.mrb[20].mxu1 %v2166_v38 }
  0xaf   : > { %851 = vmatprep.mubr.bf16.mxu0 %v1987_v15  ;;  %924 = vmatprep.mubr.bf16.mxu1 %v1987_v15 }
  0xb6   : > { %852 = vmatmul.mubr.bf16.gmra.mrb[24].mxu0 %v2172_v57  ;;  %925 = vmatmul.mubr.bf16.gmra.mrb[24].mxu1 %v2172_v57 }
  0xb7   : > { %861 = vmatprep.mubr.bf16.mxu0 %v1987_v15  ;;  %934 = vmatprep.mubr.bf16.mxu1 %v1987_v15 }
  0xbe   : > { %862 = vmatmul.mubr.bf16.gmra.mrb[28].mxu0 %v226_v12  ;;  %935 = vmatmul.mubr.bf16.gmra.mrb[28].mxu1 %v226_v12 }
 0x159   : > { %v687_v19 = vpop.f32.mrb[0].mxu0  ;;  %v760_v24 = vpop.f32.mrb[0].mxu1 }
 0x15a   : > { %v689_v23 = vpop.f32.mrb[1].mxu0  ;;  %v762_v26 = vpop.f32.mrb[1].mxu1  ;;  %v2226_v53 = vadd.f32 %v687_v19, %v2206_v43  ;;  %v2245_v61 = vadd.f32 %v760_v24, %v2231_v55  ;;  %v2293_v19 = vrot.slane %v291_v41, %v319_v9 }
 0x15b   : > { %v691_v25 = vpop.f32.mrb[2].mxu0  ;;  %v764_v28 = vpop.f32.mrb[2].mxu1  ;;  %v2229_v54 = vadd.f32 %v689_v23, %v2208_v44  ;;  %v2279_v14 = vadd.f32 %v762_v26, %v2247_v62 }
 0x15c   : > { %v693_v27 = vpop.f32.mrb[3].mxu0  ;;  %v766_v29 = vpop.f32.mrb[3].mxu1  ;;  %v2235_v57 = vadd.f32 %v691_v25, %v2206_v43  ;;  %v2262_v6 = vadd.f32 %v764_v28, %v2231_v55 }
 0x15d   : > { %v2238_v58 = vadd.f32 %v693_v27, %v2208_v44  ;;  %v945_v60 = vmax.f32 %v2226_v53, %v2229_v54  ;;  %v2302_v27 = vadd.f32 %v766_v29, %v2247_v62 }
 0x15e   : > { %2934 = vst [vmem:[#allocation15_spill] sm:$0xff] %v2235_v57  ;;  %2935 = vst [vmem:[#allocation16_spill] sm:$0xff] %v2262_v6 }
 0x15f   : > { %v954_v5 = vmax.f32 %v2235_v57, %v2238_v58  ;;  %v946_v13 = vmax.f32 %v945_v60, %v2245_v61 }
 0x161   : > { %v697_v31 = vpop.f32.mrb[4].mxu0  ;;  %v770_v34 = vpop.f32.mrb[4].mxu1  ;;  %v955_v22 = vmax.f32 %v954_v5, %v2262_v6  ;;  %v947_v26 = vmax.f32 %v946_v13, %v2279_v14 }
 0x162   : > { %v699_v33 = vpop.f32.mrb[5].mxu0  ;;  %v2195_v36 = vpop.f32.mrb[5].mxu1  ;;  %v2270_v10 = vadd.f32 %v697_v31, %v2206_v43  ;;  %v2298_v24 = vadd.f32 %v770_v34, %v2231_v55 }
 0x163   : > { %v701_v35 = vpop.f32.mrb[6].mxu0  ;;  %v774_v37 = vpop.f32.mrb[6].mxu1  ;;  %v2273_v11 = vadd.f32 %v699_v33, %v2208_v44  ;;  %v956_v29 = vmax.f32 %v955_v22, %v2302_v27  ;;  %v2328_v4 = vadd.f32 %v2195_v36, %v2247_v62 }
 0x164   : > { %v703_v15 = vpop.f32.mrb[7].mxu0  ;;  %v2197_v38 = vpop.f32.mrb[7].mxu1  ;;  %2936 = vst [vmem:[#allocation17_spill] sm:$0xff] %v2270_v10  ;;  %v2284_v17 = vadd.f32 %v701_v35, %v2206_v43  ;;  %2940 = vst [vmem:[#allocation21_spill] sm:$0xff] %v2298_v24  ;;  %v2310_v33 = vadd.f32 %v774_v37, %v2231_v55 }
 0x165   : > { %2937 = vst [vmem:[#allocation18_spill] sm:$0xff] %v2273_v11  ;;  %v2287_v18 = vadd.f32 %v703_v15, %v2208_v44  ;;  %v963_v23 = vmax.f32 %v2270_v10, %v2273_v11  ;;  %v2315_v15 = vrot.slane %v291_v41, %v323_v21  ;;  %2944 = vst [vmem:[#allocation25_spill] sm:$0xff] %v2328_v4 }
 0x166   : > { %2938 = vst [vmem:[#allocation19_spill] sm:$0xff] %v2284_v17 }
 0x167   : > { %2939 = vst [vmem:[#allocation20_spill] sm:$0xff] %v2287_v18  ;;  %v972_v32 = vmax.f32 %v2284_v17, %v2287_v18  ;;  %v964_v1 = vmax.f32 %v963_v23, %v2298_v24 }
 0x169   : > { %v2204_v42 = vpop.f32.mrb[8].mxu0  ;;  %v2213_v47 = vpop.f32.mrb[8].mxu1  ;;  %v973_v23 = vmax.f32 %v972_v32, %v2310_v33 }
 0x16a   : > { %v2211_v46 = vpop.f32.mrb[9].mxu0  ;;  %v2217_v49 = vpop.f32.mrb[9].mxu1  ;;  %v2335_v9 = vadd.f32 %v2204_v42, %v2206_v43 }
 0x16b   : > { %v2215_v48 = vpop.f32.mrb[10].mxu0  ;;  %v2221_v51 = vpop.f32.mrb[10].mxu1  ;;  %v2339_v13 = vadd.f32 %v2211_v46, %v2208_v44 }
 0x16c   : > { %v2219_v50 = vpop.f32.mrb[11].mxu0  ;;  %v2223_v52 = vpop.f32.mrb[11].mxu1  ;;  %2946 = vst [vmem:[#allocation27_spill] sm:$0xff] %v2335_v9  ;;  %v2346_v36 = vadd.f32 %v2215_v48, %v2206_v43  ;;  %v2363_v48 = vadd.f32 %v2197_v38, %v2247_v62 }
 0x16d   : > { %2947 = vst [vmem:[#allocation28_spill] sm:$0xff] %v2339_v13 }
 0x16e   : > { %2948 = vst [vmem:[#allocation29_spill] sm:$0xff] %v2346_v36  ;;  %2950 = vst [vmem:[#allocation31_spill] sm:$0xff] %v2363_v48  ;;  %v974_v38 = vmax.f32 %v973_v23, %v2363_v48 }
 0x171   : > { %v2240_v59 = vpop.f32.mrb[12].mxu0  ;;  %v2251_v0 = vpop.f32.mrb[12].mxu1 }
 0x172   : > { %v2249_v63 = vpop.f32.mrb[13].mxu0  ;;  %v2256_v3 = vpop.f32.mrb[13].mxu1 }
 0x173   : > { %v2254_v2 = vpop.f32.mrb[14].mxu0  ;;  %v2266_v8 = vpop.f32.mrb[14].mxu1 }
 0x174   : > { %v2264_v7 = vpop.f32.mrb[15].mxu0  ;;  %v2275_v12 = vpop.f32.mrb[15].mxu1 }
 0x179   : > { %v833_v25 = vpop.f32.mrb[16].mxu0  ;;  %v906_v31 = vpop.f32.mrb[16].mxu1 }
 0x17a   : > { %v2305_v28 = vadd.f32 %v833_v25, %v2281_v16  ;;  %v835_v30 = vpop.f32.mrb[17].mxu0  ;;  %v908_v39 = vpop.f32.mrb[17].mxu1  ;;  %v2323_v56 = vadd.f32 %v906_v31, %v2293_v19  ;;  %v2350_v25 = vadd.f32 %v2219_v50, %v2208_v44  ;;  %v965_v31 = vmax.f32 %v964_v1, %v2328_v4 }
 0x17b   : > { %v2313_v34 = vadd.f32 %v835_v30, %v2289_v20  ;;  %v837_v35 = vpop.f32.mrb[18].mxu0  ;;  %v910_v37 = vpop.f32.mrb[18].mxu1  ;;  %v2367_v50 = vadd.f32 %v2213_v47, %v2231_v55  ;;  %v2381_v47 = vadd.f32 %v2221_v51, %v2231_v55 }
 0x17c   : > { %2941 = vst [vmem:[#allocation22_spill] sm:$0xff] %v2305_v28  ;;  %v948_v40 = vmax.f32 %v947_v26, %v2305_v28  ;;  %v2320_v45 = vadd.f32 %v837_v35, %v2281_v16  ;;  %v839_v60 = vpop.f32.mrb[19].mxu0  ;;  %v912_v5 = vpop.f32.mrb[19].mxu1  ;;  %2949 = vst [vmem:[#allocation30_spill] sm:$0xff] %v2350_v25  ;;  %v2354_v26 = vadd.f32 %v908_v39, %v2315_v15 }
 0x17d   : > { %2942 = vst [vmem:[#allocation23_spill] sm:$0xff] %v2313_v34  ;;  %v2331_v41 = vadd.f32 %v839_v60, %v2289_v20  ;;  %v2357_v46 = vadd.f32 %v910_v37, %v2293_v19  ;;  %v981_v35 = vmax.f32 %v2335_v9, %v2339_v13  ;;  %v990_v1 = vmax.f32 %v2346_v36, %v2350_v25 }
 0x17e   : > { %2943 = vst [vmem:[#allocation24_spill] sm:$0xff] %v2320_v45  ;;  %v957_v21 = vmax.f32 %v956_v29, %v2320_v45  ;;  %v949_v22 = vmax.f32 %v948_v40, %v2313_v34  ;;  %2952 = vst [vmem:[#allocation33_spill] sm:$0xff] %v2381_v47  ;;  %v2387_v13 = vadd.f32 %v912_v5, %v2315_v15 }
 0x17f   : > { %2945 = vst [vmem:[#allocation26_spill] sm:$0xff] %v2331_v41  ;;  %v2402_v36 = vadd.f32 %v2240_v59, %v2206_v43  ;;  %v2406_v5 = vadd.f32 %v2249_v63, %v2208_v44  ;;  %v991_v48 = vmax.f32 %v990_v1, %v2381_v47  ;;  %v2418_v59 = vadd.f32 %v2254_v2, %v2206_v43 }
 0x180   : > { %v958_v42 = vmax.f32 %v957_v21, %v2331_v41  ;;  %v950_v30 = vmax.f32 %v949_v22, %v2323_v56  ;;  %2954 = vst [vmem:[#allocation35_spill] sm:$0xff] %v2387_v13  ;;  %v2422_v63 = vadd.f32 %v2264_v7, %v2208_v44  ;;  %v2434_v1 = vadd.f32 %v2223_v52, %v2247_v62 }
 0x181   : > { %v843_v32 = vpop.f32.mrb[20].mxu0  ;;  %v916_v40 = vpop.f32.mrb[20].mxu1  ;;  %2956 = vst [vmem:[#allocation37_spill] sm:$0xff] %v2402_v36  ;;  %2957 = vst [vmem:[#allocation38_spill] sm:$0xff] %v2406_v5  ;;  %v999_v43 = vmax.f32 %v2402_v36, %v2406_v5  ;;  %v2440_v44 = vadd.f32 %v2251_v0, %v2231_v55  ;;  %v2453_v0 = vadd.f32 %v2266_v8, %v2231_v55 }
 0x182   : > { %v2372_v39 = vadd.f32 %v843_v32, %v2281_v16  ;;  %v845_v29 = vpop.f32.mrb[21].mxu0  ;;  %v951_v60 = vmax.f32 %v950_v30, %v2354_v26  ;;  %v959_v37 = vmax.f32 %v958_v42, %v2357_v46  ;;  %v918_v32 = vpop.f32.mrb[21].mxu1  ;;  %v2394_v23 = vadd.f32 %v916_v40, %v2293_v19  ;;  %2958 = vst [vmem:[#allocation39_spill] sm:$0xff] %v2418_v59 }
 0x183   : > { %v2384_v21 = vadd.f32 %v845_v29, %v2289_v20  ;;  %v847_v22 = vpop.f32.mrb[22].mxu0  ;;  %v920_v51 = vpop.f32.mrb[22].mxu1  ;;  %v2398_v29 = vadd.f32 %v2217_v49, %v2247_v62  ;;  %2959 = vst [vmem:[#allocation40_spill] sm:$0xff] %v2422_v63  ;;  %2961 = vst [vmem:[#allocation42_spill] sm:$0xff] %v2434_v1  ;;  %v1000_v8 = vmax.f32 %v999_v43, %v2440_v44 }
 0x184   : > { %2951 = vst [vmem:[#allocation32_spill] sm:$0xff] %v2372_v39  ;;  %v966_v30 = vmax.f32 %v965_v31, %v2372_v39  ;;  %v2391_v42 = vadd.f32 %v847_v22, %v2281_v16  ;;  %2955 = vst [vmem:[#allocation36_spill] sm:$0xff] %v2394_v23  ;;  %v849_v25 = vpop.f32.mrb[23].mxu0  ;;  %952 = vmax.xlane.f32.xlu0 %v951_v60  ;;  %v922_v40 = vpop.f32.mrb[23].mxu1  ;;  %v982_v22 = vmax.f32 %v981_v35, %v2367_v50 }
 0x185   : > { %2953 = vst [vmem:[#allocation34_spill] sm:$0xff] %v2384_v21  ;;  %v2409_v31 = vadd.f32 %v849_v25, %v2289_v20  ;;  %v960_v9 = vmax.f32 %v959_v37, %v2387_v13  ;;  %v2426_v35 = vadd.f32 %v918_v32, %v2315_v15  ;;  %2962 = vst [vmem:[#allocation43_spill] sm:$0xff] %v2440_v44 }
 0x186   : > { %v975_v60 = vmax.f32 %v974_v38, %v2391_v42  ;;  %v967_v49 = vmax.f32 %v966_v30, %v2384_v21  ;;  %v2429_v38 = vadd.f32 %v920_v51, %v2293_v19  ;;  %v983_v7 = vmax.f32 %v982_v22, %v2398_v29  ;;  %2963 = vst [vmem:[#allocation44_spill] sm:$0xff] %v2453_v0 }
 0x187   : > { %v2459_v36 = vadd.f32 %v922_v40, %v2315_v15 }
 0x188   : > { %v976_v25 = vmax.f32 %v975_v60, %v2409_v31  ;;  %2960 = vst [vmem:[#allocation41_spill] sm:$0xff] %v2429_v38  ;;  %961 = vmax.xlane.f32.xlu0 %v960_v9  ;;  %v968_v37 = vmax.f32 %v967_v49, %v2394_v23  ;;  %v992_v60 = vmax.f32 %v991_v48, %v2434_v1 }
 0x189   : > { %v853_v2 = vpop.f32.mrb[24].mxu0  ;;  %v926_v30 = vpop.f32.mrb[24].mxu1  ;;  %v1008_v49 = vmax.f32 %v2418_v59, %v2422_v63 }
 0x18a   : > { %v2444_v32 = vadd.f32 %v853_v2, %v2281_v16  ;;  %v855_v9 = vpop.f32.mrb[25].mxu0  ;;  %v969_v51 = vmax.f32 %v968_v37, %v2426_v35  ;;  %v977_v52 = vmax.f32 %v976_v25, %v2429_v38  ;;  %v928_v5 = vpop.f32.mrb[25].mxu1  ;;  %v2466_v48 = vadd.f32 %v926_v30, %v2293_v19 }
 0x18b   : > { %v2456_v22 = vadd.f32 %v855_v9, %v2289_v20  ;;  %v857_v2 = vpop.f32.mrb[26].mxu0  ;;  %v930_v55 = vpop.f32.mrb[26].mxu1  ;;  %v2471_v9 = vadd.f32 %v2256_v3, %v2247_v62  ;;  %v1009_v1 = vmax.f32 %v1008_v49, %v2453_v0  ;;  %v2482_v43 = vadd.f32 %v928_v5, %v2315_v15 }
 0x18c   : > { %v984_v37 = vmax.f32 %v983_v7, %v2444_v32  ;;  %v2463_v25 = vadd.f32 %v857_v2, %v2281_v16  ;;  %v859_v63 = vpop.f32.mrb[27].mxu0  ;;  %970 = vmax.xlane.f32.xlu1 %v969_v51  ;;  %v932_v59 = vpop.f32.mrb[27].mxu1  ;;  %v978_v30 = vmax.f32 %v977_v52, %v2459_v36  ;;  %v2485_v3 = vadd.f32 %v930_v55, %v2293_v19 }
 0x18d   : > { %2965 = vst [vmem:[#allocation46_spill] sm:$0xff] %v2471_v9  ;;  %v2474_v40 = vadd.f32 %v859_v63, %v2289_v20  ;;  %2967 = vst [vmem:[#allocation48_spill] sm:$0xff] %v2482_v43  ;;  %v1001_v44 = vmax.f32 %v1000_v8, %v2471_v9  ;;  %v2494_v49 = vadd.f32 %v932_v59, %v2315_v15 }
 0x18e   : > { %2964 = vst [vmem:[#allocation45_spill] sm:$0xff] %v2463_v25  ;;  %v985_v7 = vmax.f32 %v984_v37, %v2456_v22  ;;  %v993_v2 = vmax.f32 %v992_v60, %v2463_v25  ;;  %2968 = vst [vmem:[#allocation49_spill] sm:$0xff] %v2485_v3  ;;  %v2491_v60 = vadd.f32 %v2275_v12, %v2247_v62 }
 0x18f   : > { %2966 = vst [vmem:[#allocation47_spill] sm:$0xff] %v2474_v40  ;;  %2970 = vst [vmem:[#allocation51_spill] sm:$0xff] %v2494_v49 }
 0x190   : > { %v994_v51 = vmax.f32 %v993_v2, %v2474_v40  ;;  %979 = vmax.xlane.f32.xlu1 %v978_v30  ;;  %v986_v63 = vmax.f32 %v985_v7, %v2466_v48  ;;  %2969 = vst [vmem:[#allocation50_spill] sm:$0xff] %v2491_v60  ;;  %v1010_v7 = vmax.f32 %v1009_v1, %v2491_v60 }
 0x191   : > { %v863_v52 = vpop.f32.mrb[28].mxu0  ;;  %v936_v2 = vpop.f32.mrb[28].mxu1 }
 0x192   : > { %v2497_v37 = vadd.f32 %v863_v52, %v2281_v16  ;;  %v865_v5 = vpop.f32.mrb[29].mxu0  ;;  %v987_v55 = vmax.f32 %v986_v63, %v2482_v43  ;;  %v995_v30 = vmax.f32 %v994_v51, %v2485_v3  ;;  %v938_v12 = vpop.f32.mrb[29].mxu1  ;;  %v2510_v52 = vadd.f32 %v936_v2, %v2293_v19 }
 0x193   : > { %v2503_v8 = vadd.f32 %v865_v5, %v2289_v20  ;;  %v867_v62 = vpop.f32.mrb[30].mxu0  ;;  %v940_v63 = vpop.f32.mrb[30].mxu1 }
 0x194   : > { %v1002_v0 = vmax.f32 %v1001_v44, %v2497_v37  ;;  %v2507_v59 = vadd.f32 %v867_v62, %v2281_v16  ;;  %2971 = vst [vmem:[#allocation52_spill] sm:$0xff] %v2510_v52  ;;  %v869_v9 = vpop.f32.mrb[31].mxu0  ;;  %988 = vmax.xlane.f32.xlu0 %v987_v55  ;;  %v996_v51 = vmax.f32 %v995_v30, %v2494_v49  ;;  %v942_v5 = vpop.f32.mrb[31].mxu1 }
 0x195   : > { %v2514_v1 = vadd.f32 %v869_v9, %v2289_v20  ;;  %v2520_v44 = vadd.f32 %v938_v12, %v2315_v15  ;;  %v2523_v2 = vadd.f32 %v940_v63, %v2293_v19  ;;  %v2527_v30 = vadd.f32 %v942_v5, %v2315_v15 }
 0x196   : > { %v1003_v60 = vmax.f32 %v1002_v0, %v2503_v8  ;;  %v1011_v3 = vmax.f32 %v1010_v7, %v2507_v59  ;;  %997 = vmax.xlane.f32.xlu1 %v996_v51 }
 0x198   : > { %v1012_v16 = vmax.f32 %v1011_v3, %v2514_v1  ;;  %v1004_v55 = vmax.f32 %v1003_v60, %v2510_v52 }
 0x19a   : > { %v1005_v20 = vmax.f32 %v1004_v55, %v2520_v44  ;;  %v1013_v0 = vmax.f32 %v1012_v16, %v2523_v2 }
 0x19c   : > { %1006 = vmax.xlane.f32.xlu0 %v1005_v20  ;;  %v1014_v9 = vmax.f32 %v1013_v0, %v2527_v30 }
 0x19e   : > { %1015 = vmax.xlane.f32.xlu1 %v1014_v9 }
 0x211   : > { %v2532_v3 = vpop.xlane.xlu0 %952 }
 0x212   : > { %v1017_v7 = vsub.f32 %v2226_v53, %v2532_v3  ;;  %v1018_v19 = vsub.f32 %v2229_v54, %v2532_v3  ;;  %v1019_v15 = vsub.f32 %v2245_v61, %v2532_v3  ;;  %v1020_v60 = vsub.f32 %v2279_v14, %v2532_v3 }
 0x213   : > { %v1021_v62 = vsub.f32 %v2305_v28, %v2532_v3  ;;  %v1022_v5 = vsub.f32 %v2313_v34, %v2532_v3  ;;  %v1023_v9 = vsub.f32 %v2323_v56, %v2532_v3 }
 0x214   : > { %v1081_v12 = vmul.f32 1.442695, %v1017_v7  ;;  %v1083_v63 = vmul.f32 1.442695, %v1018_v19  ;;  %v1085_v16 = vmul.f32 1.442695, %v1019_v15  ;;  %v1024_v15 = vsub.f32 %v2354_v26, %v2532_v3 }
 0x215   : > { %v2544_v51 = vpop.xlane.xlu0 %961  ;;  %v1087_v0 = vmul.f32 1.442695, %v1020_v60  ;;  %v1089_v7 = vmul.f32 1.442695, %v1021_v62  ;;  %v1091_v19 = vmul.f32 1.442695, %v1022_v5 }
 0x216   : > { %v1025_v55 = vsub.f32 %v2235_v57, %v2544_v51  ;;  %1688 = vpow2.f32 %v1081_v12  ;;  %v1026_v20 = vsub.f32 %v2238_v58, %v2544_v51  ;;  %v1027_v28 = vsub.f32 %v2262_v6, %v2544_v51 }
 0x217   : > { %1690 = vpow2.f32 %v1083_v63  ;;  %v1028_v12 = vsub.f32 %v2302_v27, %v2544_v51  ;;  %v1093_v63 = vmul.f32 1.442695, %v1023_v9  ;;  %v1029_v62 = vsub.f32 %v2320_v45, %v2544_v51 }
 0x218   : > { %1692 = vpow2.f32 %v1085_v16  ;;  %v1097_v34 = vmul.f32 1.442695, %v1025_v55  ;;  %v1099_v60 = vmul.f32 1.442695, %v1026_v20  ;;  %v1030_v5 = vsub.f32 %v2331_v41, %v2544_v51 }
 0x219   : > { %v2558_v57 = vpop.xlane.xlu1 %970  ;;  %1694 = vpow2.f32 %v1087_v0  ;;  %v1101_v16 = vmul.f32 1.442695, %v1027_v28  ;;  %v1095_v6 = vmul.f32 1.442695, %v1024_v15  ;;  %v1103_v20 = vmul.f32 1.442695, %v1028_v12 }
 0x21a   : > { %1696 = vpow2.f32 %v1089_v7  ;;  %v1033_v55 = vsub.f32 %v2270_v10, %v2558_v57  ;;  %v1034_v0 = vsub.f32 %v2273_v11, %v2558_v57  ;;  %v1031_v9 = vsub.f32 %v2357_v46, %v2544_v51 }
 0x21b   : > { %1698 = vpow2.f32 %v1091_v19  ;;  %v1105_v19 = vmul.f32 1.442695, %v1029_v62  ;;  %v1107_v41 = vmul.f32 1.442695, %v1030_v5  ;;  %v1035_v28 = vsub.f32 %v2298_v24, %v2558_v57 }
 0x21c   : > { %1700 = vpow2.f32 %v1097_v34  ;;  %v1032_v34 = vsub.f32 %v2387_v13, %v2544_v51  ;;  %v1113_v11 = vmul.f32 1.442695, %v1033_v55  ;;  %v1036_v12 = vsub.f32 %v2328_v4, %v2558_v57 }
 0x21d   : > { %1702 = vpow2.f32 %v1099_v60  ;;  %v1109_v62 = vmul.f32 1.442695, %v1031_v9  ;;  %v2578_v5 = vpop.xlane.xlu1 %979 }
 0x21e   : > { %1704 = vpow2.f32 %v1093_v63  ;;  %v1115_v63 = vmul.f32 1.442695, %v1034_v0  ;;  %v1111_v55 = vmul.f32 1.442695, %v1032_v34  ;;  %v1039_v0 = vsub.f32 %v2394_v23, %v2558_v57 }
 0x21f   : > { %1706 = vpow2.f32 %v1101_v16  ;;  %v1119_v9 = vmul.f32 1.442695, %v1036_v12  ;;  %v1040_v34 = vsub.f32 %v2426_v35, %v2558_v57 }
 0x220   : > { %v1689_v7 = vpop.eup %1688  ;;  %1708 = vpow2.f32 %v1095_v6  ;;  %v1037_v6 = vsub.f32 %v2372_v39, %v2558_v57 }
 0x221   : > { %v1691_v45 = vpop.eup %1690  ;;  %1710 = vpow2.f32 %v1103_v20  ;;  %v1038_v20 = vsub.f32 %v2384_v21, %v2558_v57  ;;  %v1125_v21 = vmul.f32 1.442695, %v1039_v0  ;;  %v2594_v13 = vpop.xlane.xlu0 %988  ;;  %v1045_v0 = vsub.f32 %v2391_v42, %v2578_v5 }
 0x222   : > { %v1209_v15 = vadd.f32 %v1691_v45, %v1689_v7  ;;  %v1693_v60 = vpop.eup %1692  ;;  %1712 = vpow2.f32 %v1105_v19  ;;  %v1117_v45 = vmul.f32 1.442695, %v1035_v28 }
 0x223   : > { %v1695_v16 = vpop.eup %1694  ;;  %1714 = vpow2.f32 %v1107_v41  ;;  %v1041_v41 = vsub.f32 %v2284_v17, %v2578_v5  ;;  %v1123_v12 = vmul.f32 1.442695, %v1038_v20 }
 0x224   : > { %v1210_v10 = vadd.f32 %v1693_v60, %v1209_v15  ;;  %v1697_v7 = vpop.eup %1696  ;;  %1716 = vpow2.f32 %v1113_v11  ;;  %v1121_v11 = vmul.f32 1.442695, %v1037_v6  ;;  %v1127_v6 = vmul.f32 1.442695, %v1040_v34  ;;  %v2973_v34 = vld [vmem:[#allocation27_spill] sm:$0xff] }
 0x225   : > { %v1699_v4 = vpop.eup %1698  ;;  %1718 = vpow2.f32 %v1115_v63 }
 0x226   : > { %v1211_v24 = vadd.f32 %v1695_v16, %v1210_v10  ;;  %v1701_v19 = vpop.eup %1700  ;;  %1720 = vpow2.f32 %v1109_v62  ;;  %v1042_v10 = vsub.f32 %v2287_v18, %v2578_v5  ;;  %v1129_v18 = vmul.f32 1.442695, %v1041_v41 }
 0x227   : > { %v1703_v28 = vpop.eup %1702  ;;  %1722 = vpow2.f32 %v1117_v45 }
 0x228   : > { %v1212_v15 = vadd.f32 %v1697_v7, %v1211_v24  ;;  %v1705_v60 = vpop.eup %1704  ;;  %1724 = vpow2.f32 %v1111_v55  ;;  %v1218_v63 = vadd.f32 %v1703_v28, %v1701_v19  ;;  %v1043_v24 = vsub.f32 %v2310_v33, %v2578_v5 }
 0x229   : > { %v1707_v23 = vpop.eup %1706  ;;  %1726 = vpow2.f32 %v1119_v9  ;;  %v1131_v55 = vmul.f32 1.442695, %v1042_v10 }
 0x22a   : > { %v1213_v16 = vadd.f32 %v1699_v4, %v1212_v15  ;;  %v1709_v62 = vpop.eup %1708  ;;  %v1219_v17 = vadd.f32 %v1707_v23, %v1218_v63  ;;  %1728 = vpow2.f32 %v1121_v11  ;;  %v2972_v4 = vld [vmem:[#allocation31_spill] sm:$0xff]  ;;  %v1046_v23 = vsub.f32 %v2409_v31, %v2578_v5 }
 0x22b   : > { %v1711_v39 = vpop.eup %1710  ;;  %v1044_v45 = vsub.f32 %v2972_v4, %v2578_v5  ;;  %1730 = vpow2.f32 %v1123_v12  ;;  %v1133_v41 = vmul.f32 1.442695, %v1043_v24  ;;  %v1049_v11 = vsub.f32 %v2973_v34, %v2594_v13 }
 0x22c   : > { %v1214_v7 = vadd.f32 %v1705_v60, %v1213_v16  ;;  %v1713_v20 = vpop.eup %1712  ;;  %v1220_v9 = vadd.f32 %v1711_v39, %v1219_v17  ;;  %1732 = vpow2.f32 %v1125_v21  ;;  %v2974_v17 = vld [vmem:[#allocation28_spill] sm:$0xff]  ;;  %v1047_v16 = vsub.f32 %v2429_v38, %v2578_v5 }
 0x22d   : > { %v1715_v15 = vpop.eup %1714  ;;  %1734 = vpow2.f32 %v1129_v18  ;;  %v1050_v39 = vsub.f32 %v2974_v17, %v2594_v13  ;;  %v1135_v21 = vmul.f32 1.442695, %v1044_v45  ;;  %v1139_v34 = vmul.f32 1.442695, %v1046_v23  ;;  %v2612_v45 = vpop.xlane.xlu1 %997 }
 0x22e   : > { %v1215_v19 = vadd.f32 %v1709_v62, %v1214_v7  ;;  %v1717_v28 = vpop.eup %1716  ;;  %v1221_v60 = vadd.f32 %v1713_v20, %v1220_v9  ;;  %1736 = vpow2.f32 %v1131_v55  ;;  %v1137_v62 = vmul.f32 1.442695, %v1045_v0 }
 0x22f   : > { %v1719_v10 = vpop.eup %1718  ;;  %1738 = vpow2.f32 %v1127_v6  ;;  %v1051_v18 = vsub.f32 %v2367_v50, %v2594_v13  ;;  %v1048_v17 = vsub.f32 %v2459_v36, %v2578_v5  ;;  %v1145_v38 = vmul.f32 1.442695, %v1049_v11 }
 0x230   : > { %1216 = vadd.xlane.f32.xlu0 %v1215_v19  ;;  %v1721_v63 = vpop.eup %1720  ;;  %v1222_v12 = vadd.f32 %v1715_v15, %v1221_v60  ;;  %v1227_v24 = vadd.f32 %v1719_v10, %v1717_v28  ;;  %1740 = vpow2.f32 %v1133_v41  ;;  %v1141_v6 = vmul.f32 1.442695, %v1047_v16 }
 0x231   : > { %v1723_v7 = vpop.eup %1722  ;;  %1742 = vpow2.f32 %v1135_v21  ;;  %v1052_v0 = vsub.f32 %v2398_v29, %v2594_v13  ;;  %v1147_v15 = vmul.f32 1.442695, %v1050_v39  ;;  %v1053_v28 = vsub.f32 %v2444_v32, %v2594_v13  ;;  %v2975_v21 = vld [vmem:[#allocation29_spill] sm:$0xff] }
 0x232   : > { %v1725_v20 = vpop.eup %1724  ;;  %v1223_v19 = vadd.f32 %v1721_v63, %v1222_v12  ;;  %v1228_v9 = vadd.f32 %v1723_v7, %v1227_v24  ;;  %1744 = vpow2.f32 %v1137_v62  ;;  %v1054_v11 = vsub.f32 %v2456_v22, %v2594_v13  ;;  %v2976_v62 = vld [vmem:[#allocation30_spill] sm:$0xff] }
 0x233   : > { %v1727_v55 = vpop.eup %1726  ;;  %1746 = vpow2.f32 %v1139_v34  ;;  %v1149_v10 = vmul.f32 1.442695, %v1051_v18  ;;  %v1057_v16 = vsub.f32 %v2975_v21, %v2612_v45  ;;  %v1143_v24 = vmul.f32 1.442695, %v1048_v17 }
 0x234   : > { %v1224_v23 = vadd.f32 %v1725_v20, %v1223_v19  ;;  %v1229_v41 = vadd.f32 %v1727_v55, %v1228_v9  ;;  %v1729_v60 = vpop.eup %1728  ;;  %1748 = vpow2.f32 %v1145_v38  ;;  %v1058_v7 = vsub.f32 %v2976_v62, %v2612_v45 }
 0x235   : > { %v1731_v63 = vpop.eup %1730  ;;  %v1055_v20 = vsub.f32 %v2466_v48, %v2594_v13  ;;  %1750 = vpow2.f32 %v1147_v15  ;;  %v1151_v34 = vmul.f32 1.442695, %v1052_v0  ;;  %v1153_v18 = vmul.f32 1.442695, %v1053_v28  ;;  %v2630_v0 = vpop.xlane.xlu0 %1006  ;;  %v2977_v28 = vld [vmem:[#allocation42_spill] sm:$0xff] }
 0x236   : > { %1225 = vadd.xlane.f32.xlu1 %v1224_v23  ;;  %v1230_v12 = vadd.f32 %v1729_v60, %v1229_v41  ;;  %v1733_v39 = vpop.eup %1732  ;;  %1752 = vpow2.f32 %v1141_v6  ;;  %v1056_v23 = vsub.f32 %v2482_v43, %v2594_v13  ;;  %v1155_v17 = vmul.f32 1.442695, %v1054_v11 }
 0x237   : > { %v1735_v19 = vpop.eup %1734  ;;  %1754 = vpow2.f32 %v1149_v10  ;;  %v1059_v38 = vsub.f32 %v2381_v47, %v2612_v45  ;;  %v1161_v21 = vmul.f32 1.442695, %v1057_v16  ;;  %v1157_v6 = vmul.f32 1.442695, %v1055_v20 }
 0x238   : > { %v1231_v9 = vadd.f32 %v1731_v63, %v1230_v12  ;;  %v1737_v55 = vpop.eup %1736  ;;  %1756 = vpow2.f32 %v1143_v24  ;;  %v1060_v63 = vsub.f32 %v2977_v28, %v2612_v45  ;;  %v1163_v12 = vmul.f32 1.442695, %v1058_v7 }
 0x239   : > { %v1739_v41 = vpop.eup %1738  ;;  %v1236_v62 = vadd.f32 %v1737_v55, %v1735_v19  ;;  %1758 = vpow2.f32 %v1151_v34  ;;  %v1061_v11 = vsub.f32 %v2463_v25, %v2612_v45  ;;  %v1062_v16 = vsub.f32 %v2474_v40, %v2612_v45  ;;  %v2978_v34 = vld [vmem:[#allocation37_spill] sm:$0xff] }
 0x23a   : > { %v1232_v60 = vadd.f32 %v1733_v39, %v1231_v9  ;;  %v1741_v15 = vpop.eup %1740  ;;  %1760 = vpow2.f32 %v1153_v18  ;;  %v1165_v24 = vmul.f32 1.442695, %v1059_v38  ;;  %v1065_v20 = vsub.f32 %v2978_v34, %v2630_v0  ;;  %v2980_v55 = vld [vmem:[#allocation49_spill] sm:$0xff] }
 0x23b   : > { %v1237_v10 = vadd.f32 %v1741_v15, %v1236_v62  ;;  %v1743_v47 = vpop.eup %1742  ;;  %1762 = vpow2.f32 %v1155_v17  ;;  %v1159_v9 = vmul.f32 1.442695, %v1056_v23  ;;  %v2979_v62 = vld [vmem:[#allocation38_spill] sm:$0xff]  ;;  %v1167_v17 = vmul.f32 1.442695, %v1060_v63 }
 0x23c   : > { %v1233_v43 = vadd.f32 %v1739_v41, %v1232_v60  ;;  %v1745_v39 = vpop.eup %1744  ;;  %1764 = vpow2.f32 %v1161_v21  ;;  %v1066_v18 = vsub.f32 %v2979_v62, %v2630_v0  ;;  %v1063_v41 = vsub.f32 %v2980_v55, %v2612_v45  ;;  %v2981_v21 = vld [vmem:[#allocation43_spill] sm:$0xff]  ;;  %v2648_v62 = vpop.xlane.xlu1 %1015 }
 0x23d   : > { %v1238_v19 = vadd.f32 %v1743_v47, %v1237_v10  ;;  %v1747_v7 = vpop.eup %1746  ;;  %1766 = vpow2.f32 %v1163_v12  ;;  %v1169_v38 = vmul.f32 1.442695, %v1061_v11  ;;  %v1171_v47 = vmul.f32 1.442695, %v1062_v16  ;;  %v2982_v11 = vld [vmem:[#allocation46_spill] sm:$0xff] }
 0x23e   : > { %1234 = vadd.xlane.f32.xlu0 %v1233_v43  ;;  %v1749_v60 = vpop.eup %1748  ;;  %1768 = vpow2.f32 %v1157_v6  ;;  %v1064_v43 = vsub.f32 %v2494_v49, %v2612_v45  ;;  %v1067_v23 = vsub.f32 %v2981_v21, %v2630_v0  ;;  %v1177_v63 = vmul.f32 1.442695, %v1065_v20 }
 0x23f   : > { %v1239_v15 = vadd.f32 %v1745_v39, %v1238_v19  ;;  %v1751_v40 = vpop.eup %1750  ;;  %1770 = vpow2.f32 %v1165_v24  ;;  %v1173_v6 = vmul.f32 1.442695, %v1063_v41  ;;  %v1068_v39 = vsub.f32 %v2982_v11, %v2630_v0 }
 0x240   : > { %v1753_v10 = vpop.eup %1752  ;;  %1772 = vpow2.f32 %v1159_v9  ;;  %v1245_v12 = vadd.f32 %v1751_v40, %v1749_v60  ;;  %v1179_v19 = vmul.f32 1.442695, %v1066_v18  ;;  %v1069_v21 = vsub.f32 %v2497_v37, %v2630_v0 }
 0x241   : > { %v1240_v34 = vadd.f32 %v1747_v7, %v1239_v15  ;;  %v1755_v55 = vpop.eup %1754  ;;  %1774 = vpow2.f32 %v1167_v17  ;;  %v2983_v7 = vld [vmem:[#allocation39_spill] sm:$0xff]  ;;  %v1070_v40 = vsub.f32 %v2503_v8, %v2630_v0  ;;  %v1181_v20 = vmul.f32 1.442695, %v1067_v23 }
 0x242   : > { %v1757_v49 = vpop.eup %1756  ;;  %v1246_v16 = vadd.f32 %v1755_v55, %v1245_v12  ;;  %1776 = vpow2.f32 %v1169_v38  ;;  %v1073_v9 = vsub.f32 %v2983_v7, %v2648_v62  ;;  %v1175_v18 = vmul.f32 1.442695, %v1064_v43  ;;  %v2984_v55 = vld [vmem:[#allocation40_spill] sm:$0xff] }
 0x243   : > { %v1241_v24 = vadd.f32 %v1753_v10, %v1240_v34  ;;  %v1759_v25 = vpop.eup %1758  ;;  %1778 = vpow2.f32 %v1171_v47  ;;  %v1074_v15 = vsub.f32 %v2984_v55, %v2648_v62  ;;  %v1183_v38 = vmul.f32 1.442695, %v1068_v39  ;;  %v2985_v43 = vld [vmem:[#allocation44_spill] sm:$0xff] }
 0x244   : > { %v1761_v41 = vpop.eup %1760  ;;  %v1247_v60 = vadd.f32 %v1759_v25, %v1246_v16  ;;  %1780 = vpow2.f32 %v1177_v63  ;;  %v1071_v47 = vsub.f32 %v2510_v52, %v2630_v0  ;;  %v1185_v7 = vmul.f32 1.442695, %v1069_v21 }
 0x245   : > { %v1242_v17 = vadd.f32 %v1757_v49, %v1241_v24  ;;  %v1763_v34 = vpop.eup %1762  ;;  %1782 = vpow2.f32 %v1179_v19  ;;  %v1072_v25 = vsub.f32 %v2520_v44, %v2630_v0  ;;  %v1187_v49 = vmul.f32 1.442695, %v1070_v40 }
 0x246   : > { %v1765_v10 = vpop.eup %1764  ;;  %v1248_v12 = vadd.f32 %v1761_v41, %v1247_v60  ;;  %1784 = vpow2.f32 %v1173_v6  ;;  %v1075_v63 = vsub.f32 %v2985_v43, %v2648_v62  ;;  %v1193_v16 = vmul.f32 1.442695, %v1073_v9  ;;  %v2986_v6 = vld [vmem:[#allocation50_spill] sm:$0xff] }
 0x247   : > { %1243 = vadd.xlane.f32.xlu1 %v1242_v17  ;;  %v1767_v23 = vpop.eup %1766  ;;  %1786 = vpow2.f32 %v1181_v20  ;;  %v1076_v17 = vsub.f32 %v2986_v6, %v2648_v62  ;;  %v1195_v21 = vmul.f32 1.442695, %v1074_v15  ;;  %v1189_v20 = vmul.f32 1.442695, %v1071_v47 }
 0x248   : > { %v1769_v24 = vpop.eup %1768  ;;  %v1249_v19 = vadd.f32 %v1763_v34, %v1248_v12  ;;  %1788 = vpow2.f32 %v1175_v18  ;;  %v1254_v39 = vadd.f32 %v1767_v23, %v1765_v10  ;;  %v1077_v43 = vsub.f32 %v2507_v59, %v2648_v62 }
 0x249   : > { %v1771_v41 = vpop.eup %1770  ;;  %1790 = vpow2.f32 %v1183_v38  ;;  %v1197_v34 = vmul.f32 1.442695, %v1075_v63  ;;  %v1191_v12 = vmul.f32 1.442695, %v1072_v25  ;;  %v1078_v15 = vsub.f32 %v2514_v1, %v2648_v62 }
 0x24a   : > { %v1773_v60 = vpop.eup %1772  ;;  %v1250_v55 = vadd.f32 %v1769_v24, %v1249_v19  ;;  %v1255_v52 = vadd.f32 %v1771_v41, %v1254_v39  ;;  %1792 = vpow2.f32 %v1185_v7  ;;  %v1199_v23 = vmul.f32 1.442695, %v1076_v17 }
 0x24b   : > { %v1775_v40 = vpop.eup %1774  ;;  %1794 = vpow2.f32 %v1187_v49  ;;  %v1079_v49 = vsub.f32 %v2523_v2, %v2648_v62  ;;  %v1201_v63 = vmul.f32 1.442695, %v1077_v43  ;;  %v1080_v39 = vsub.f32 %v2527_v30, %v2648_v62 }
 0x24c   : > { %v1777_v18 = vpop.eup %1776  ;;  %v1251_v10 = vadd.f32 %v1773_v60, %v1250_v55  ;;  %v1256_v9 = vadd.f32 %v1775_v40, %v1255_v52  ;;  %1796 = vpow2.f32 %v1193_v16  ;;  %v1203_v16 = vmul.f32 1.442695, %v1078_v15 }
 0x24d   : > { %v1779_v38 = vpop.eup %1778  ;;  %1798 = vpow2.f32 %v1195_v21 }
 0x24e   : > { %v1781_v24 = vpop.eup %1780  ;;  %1252 = vadd.xlane.f32.xlu0 %v1251_v10  ;;  %v1257_v7 = vadd.f32 %v1777_v18, %v1256_v9  ;;  %1800 = vpow2.f32 %v1189_v20  ;;  %v1205_v20 = vmul.f32 1.442695, %v1079_v49  ;;  %v1207_v10 = vmul.f32 1.442695, %v1080_v39 }
 0x24f   : > { %v1783_v47 = vpop.eup %1782  ;;  %1802 = vpow2.f32 %v1197_v34 }
 0x250   : > { %v1785_v55 = vpop.eup %1784  ;;  %v1258_v52 = vadd.f32 %v1779_v38, %v1257_v7  ;;  %1804 = vpow2.f32 %v1191_v12  ;;  %v1263_v25 = vadd.f32 %v1783_v47, %v1781_v24 }
 0x251   : > { %v1787_v19 = vpop.eup %1786  ;;  %1806 = vpow2.f32 %v1199_v23 }
 0x252   : > { %v1789_v41 = vpop.eup %1788  ;;  %v1259_v17 = vadd.f32 %v1785_v55, %v1258_v52  ;;  %v1264_v21 = vadd.f32 %v1787_v19, %v1263_v25  ;;  %1808 = vpow2.f32 %v1201_v63 }
 0x253   : > { %v1791_v60 = vpop.eup %1790  ;;  %1810 = vpow2.f32 %v1203_v16 }
 0x254   : > { %v1793_v40 = vpop.eup %1792  ;;  %v1260_v18 = vadd.f32 %v1789_v41, %v1259_v17  ;;  %v1265_v34 = vadd.f32 %v1791_v60, %v1264_v21  ;;  %1812 = vpow2.f32 %v1205_v20 }
 0x255   : > { %v1795_v43 = vpop.eup %1794  ;;  %1814 = vpow2.f32 %v1207_v10 }
 0x256   : > { %v1797_v9 = vpop.eup %1796  ;;  %1261 = vadd.xlane.f32.xlu1 %v1260_v18  ;;  %v1266_v12 = vadd.f32 %v1793_v40, %v1265_v34 }
 0x257   : > { %v1799_v38 = vpop.eup %1798 }
 0x258   : > { %v1801_v24 = vpop.eup %1800  ;;  %v1267_v23 = vadd.f32 %v1795_v43, %v1266_v12  ;;  %v1272_v15 = vadd.f32 %v1799_v38, %v1797_v9 }
 0x259   : > { %v1803_v7 = vpop.eup %1802 }
 0x25a   : > { %v1805_v47 = vpop.eup %1804  ;;  %v1268_v55 = vadd.f32 %v1801_v24, %v1267_v23  ;;  %v1273_v63 = vadd.f32 %v1803_v7, %v1272_v15  ;;  %v2987_v15 = vld [vmem:[#allocation22_spill] sm:$0xff] }
 0x25b   : > { %v1807_v49 = vpop.eup %1806 }
 0x25c   : > { %v1269_v52 = vadd.f32 %v1805_v47, %v1268_v55  ;;  %v1274_v25 = vadd.f32 %v1807_v49, %v1273_v63  ;;  %v1809_v19 = vpop.eup %1808  ;;  %v2988_v47 = vld [vmem:[#allocation23_spill] sm:$0xff]  ;;  %v2990_v49 = vld [vmem:[#allocation16_spill] sm:$0xff] }
 0x25d   : > { %v1811_v39 = vpop.eup %1810 }
 0x25e   : > { %1270 = vadd.xlane.f32.xlu0 %v1269_v52  ;;  %v1275_v16 = vadd.f32 %v1809_v19, %v1274_v25  ;;  %v1813_v17 = vpop.eup %1812  ;;  %v2991_v19 = vld [vmem:[#allocation24_spill] sm:$0xff] }
 0x25f   : > { %v1815_v60 = vpop.eup %1814 }
 0x260   : > { %v1276_v41 = vadd.f32 %v1811_v39, %v1275_v16  ;;  %v2992_v39 = vld [vmem:[#allocation26_spill] sm:$0xff] }
 0x262   : > { %v1277_v21 = vadd.f32 %v1813_v17, %v1276_v41 }
 0x264   : > { %v1278_v20 = vadd.f32 %v1815_v60, %v1277_v21  ;;  %v2993_v21 = vld [vmem:[#allocation35_spill] sm:$0xff] }
 0x266   : > { %1279 = vadd.xlane.f32.xlu1 %v1278_v20  ;;  %v2994_v20 = vld [vmem:[#allocation17_spill] sm:$0xff] }
 0x2bd   : > { %v1217_v40 = vpop.xlane.xlu0 %1216 }
 0x2be   : > { %1816 = vlog2.f32 %v1217_v40 }
 0x2c3   : > { %v1226_v18 = vpop.xlane.xlu1 %1225 }
 0x2c4   : > { %1818 = vlog2.f32 %v1226_v18  ;;  %v2995_v18 = vld [vmem:[#allocation18_spill] sm:$0xff] }
 0x2c8   : > { %v1817_v34 = vpop.eup %1816 }
 0x2c9   : > { %v1282_v43 = vmul.f32 0.6931472, %v1817_v34 }
 0x2cb   : > { %v1297_v10 = vadd.f32 %v1282_v43, %v2532_v3  ;;  %v1235_v23 = vpop.xlane.xlu0 %1234  ;;  %v2996_v43 = vld [vmem:[#allocation21_spill] sm:$0xff] }
 0x2cc   : > { %1820 = vlog2.f32 %v1235_v23  ;;  %v2999_v23 = vld [vmem:[#allocation34_spill] sm:$0xff] }
 0x2cd   : > { %v1305_v9 = vsub.f32 %v2226_v53, %v1297_v10  ;;  %v1306_v12 = vsub.f32 %v2229_v54, %v1297_v10  ;;  %v1307_v38 = vsub.f32 %v2245_v61, %v1297_v10  ;;  %v1308_v24 = vsub.f32 %v2279_v14, %v1297_v10  ;;  %v2989_v14 = vld [vmem:[#allocation15_spill] sm:$0xff] }
 0x2ce   : > { %v1309_v7 = vsub.f32 %v2987_v15, %v1297_v10  ;;  %v1310_v55 = vsub.f32 %v2988_v47, %v1297_v10  ;;  %v1311_v63 = vsub.f32 %v2323_v56, %v1297_v10  ;;  %v1312_v3 = vsub.f32 %v2354_v26, %v1297_v10  ;;  %v1819_v53 = vpop.eup %1818 }
 0x2cf   : > { %1369 = vst [vmem:[%s2151_s29] sm:$0xff] %v1305_v9  ;;  %1370 = vst [vmem:[%s2151_s29 + $0x8] sm:$0xff] %v1306_v12  ;;  %v1284_v54 = vmul.f32 0.6931472, %v1819_v53  ;;  %v2997_v9 = vld [vmem:[#allocation25_spill] sm:$0xff] }
 0x2d0   : > { %1371 = vst [vmem:[%s2151_s29 + $0x10] sm:$0xff] %v1307_v38  ;;  %1372 = vst [vmem:[%s2151_s29 + $0x18] sm:$0xff] %v1308_v24  ;;  %v2998_v38 = vld [vmem:[#allocation32_spill] sm:$0xff] }
 0x2d1   : > { %1373 = vst [vmem:[%s2151_s29 + $0x20] sm:$0xff] %v1309_v7  ;;  %1374 = vst [vmem:[%s2151_s29 + $0x28] sm:$0xff] %v1310_v55  ;;  %v1298_v61 = vadd.f32 %v1284_v54, %v2544_v51  ;;  %v3000_v7 = vld [vmem:[#allocation36_spill] sm:$0xff]  ;;  %v3001_v54 = vld [vmem:[#allocation19_spill] sm:$0xff] }
 0x2d2   : > { %1375 = vst [vmem:[%s2151_s29 + $0x30] sm:$0xff] %v1311_v63  ;;  %1376 = vst [vmem:[%s2151_s29 + $0x38] sm:$0xff] %v1312_v3 }
 0x2d3   : > { %v1313_v56 = vsub.f32 %v2989_v14, %v1298_v61  ;;  %v1314_v26 = vsub.f32 %v2238_v58, %v1298_v61  ;;  %v1315_v52 = vsub.f32 %v2990_v49, %v1298_v61  ;;  %v1316_v25 = vsub.f32 %v2302_v27, %v1298_v61 }
 0x2d4   : > { %v1317_v16 = vsub.f32 %v2991_v19, %v1298_v61  ;;  %v1318_v41 = vsub.f32 %v2992_v39, %v1298_v61  ;;  %v1319_v17 = vsub.f32 %v2357_v46, %v1298_v61  ;;  %v1320_v60 = vsub.f32 %v2993_v21, %v1298_v61  ;;  %v1244_v51 = vpop.xlane.xlu1 %1243  ;;  %v3002_v61 = vld [vmem:[#allocation20_spill] sm:$0xff]  ;;  %v3003_v19 = vld [vmem:[#allocation41_spill] sm:$0xff] }
 0x2d5   : > { %1377 = vst [vmem:[%s2151_s29 + $0x40] sm:$0xff] %v1313_v56  ;;  %1378 = vst [vmem:[%s2151_s29 + $0x48] sm:$0xff] %v1314_v26  ;;  %1822 = vlog2.f32 %v1244_v51 }
 0x2d6   : > { %1379 = vst [vmem:[%s2151_s29 + $0x50] sm:$0xff] %v1315_v52  ;;  %1380 = vst [vmem:[%s2151_s29 + $0x58] sm:$0xff] %v1316_v25  ;;  %v1821_v58 = vpop.eup %1820 }
 0x2d7   : > { %1381 = vst [vmem:[%s2151_s29 + $0x60] sm:$0xff] %v1317_v16  ;;  %1382 = vst [vmem:[%s2151_s29 + $0x68] sm:$0xff] %v1318_v41  ;;  %v1286_v27 = vmul.f32 0.6931472, %v1821_v58 }
 0x2d8   : > { %1383 = vst [vmem:[%s2151_s29 + $0x70] sm:$0xff] %v1319_v17  ;;  %1384 = vst [vmem:[%s2151_s29 + $0x78] sm:$0xff] %v1320_v60 }
 0x2d9   : > { %v1299_v46 = vadd.f32 %v1286_v27, %v2558_v57 }
 0x2db   : > { %v1321_v40 = vsub.f32 %v2994_v20, %v1299_v46  ;;  %v1322_v34 = vsub.f32 %v2995_v18, %v1299_v46  ;;  %v1323_v10 = vsub.f32 %v2996_v43, %v1299_v46  ;;  %v1324_v12 = vsub.f32 %v2997_v9, %v1299_v46  ;;  %v1253_v57 = vpop.xlane.xlu0 %1252  ;;  %v3010_v9 = vld [vmem:[#allocation45_spill] sm:$0xff] }
 0x2dc   : > { %v1325_v24 = vsub.f32 %v2998_v38, %v1299_v46  ;;  %v1326_v15 = vsub.f32 %v2999_v23, %v1299_v46  ;;  %v1327_v47 = vsub.f32 %v3000_v7, %v1299_v46  ;;  %v1328_v55 = vsub.f32 %v2426_v35, %v1299_v46  ;;  %v3006_v46 = vld [vmem:[#allocation48_spill] sm:$0xff]  ;;  %v3011_v38 = vld [vmem:[#allocation47_spill] sm:$0xff]  ;;  %v3012_v23 = vld [vmem:[#allocation49_spill] sm:$0xff] }
 0x2dd   : > { %1385 = vst [vmem:[%s2151_s29 + $0x80] sm:$0xff] %v1321_v40  ;;  %1386 = vst [vmem:[%s2151_s29 + $0x88] sm:$0xff] %v1322_v34  ;;  %1824 = vlog2.f32 %v1253_v57  ;;  %v3008_v40 = vld [vmem:[#allocation30_spill] sm:$0xff]  ;;  %v3009_v34 = vld [vmem:[#allocation33_spill] sm:$0xff] }
 0x2de   : > { %1387 = vst [vmem:[%s2151_s29 + $0x90] sm:$0xff] %v1323_v10  ;;  %1388 = vst [vmem:[%s2151_s29 + $0x98] sm:$0xff] %v1324_v12  ;;  %v3014_v57 = vld [vmem:[#allocation37_spill] sm:$0xff] }
 0x2df   : > { %1389 = vst [vmem:[%s2151_s29 + $0xa0] sm:$0xff] %v1325_v24  ;;  %1390 = vst [vmem:[%s2151_s29 + $0xa8] sm:$0xff] %v1326_v15  ;;  %v1823_v63 = vpop.eup %1822 }
 0x2e0   : > { %1391 = vst [vmem:[%s2151_s29 + $0xb0] sm:$0xff] %v1327_v47  ;;  %1392 = vst [vmem:[%s2151_s29 + $0xb8] sm:$0xff] %v1328_v55  ;;  %v1288_v3 = vmul.f32 0.6931472, %v1823_v63 }
 0x2e2   : > { %v1300_v53 = vadd.f32 %v1288_v3, %v2578_v5  ;;  %v3015_v3 = vld [vmem:[#allocation38_spill] sm:$0xff] }
 0x2e3   : > { %v1262_v49 = vpop.xlane.xlu1 %1261 }
 0x2e4   : > { %v1329_v35 = vsub.f32 %v3001_v54, %v1300_v53  ;;  %v1330_v14 = vsub.f32 %v3002_v61, %v1300_v53  ;;  %v1331_v56 = vsub.f32 %v2310_v33, %v1300_v53  ;;  %v1332_v26 = vsub.f32 %v2972_v4, %v1300_v53  ;;  %v3005_v4 = vld [vmem:[#allocation28_spill] sm:$0xff]  ;;  %v3016_v54 = vld [vmem:[#allocation43_spill] sm:$0xff] }
 0x2e5   : > { %v1333_v52 = vsub.f32 %v2391_v42, %v1300_v53  ;;  %v1334_v25 = vsub.f32 %v2409_v31, %v1300_v53  ;;  %v1335_v16 = vsub.f32 %v3003_v19, %v1300_v53  ;;  %v1336_v5 = vsub.f32 %v2459_v36, %v1300_v53  ;;  %v3004_v31 = vld [vmem:[#allocation27_spill] sm:$0xff] }
 0x2e6   : > { %1393 = vst [vmem:[%s2151_s29 + $0xc0] sm:$0xff] %v1329_v35  ;;  %1394 = vst [vmem:[%s2151_s29 + $0xc8] sm:$0xff] %v1330_v14  ;;  %1826 = vlog2.f32 %v1262_v49 }
 0x2e7   : > { %1395 = vst [vmem:[%s2151_s29 + $0xd0] sm:$0xff] %v1331_v56  ;;  %1396 = vst [vmem:[%s2151_s29 + $0xd8] sm:$0xff] %v1332_v26  ;;  %v1825_v39 = vpop.eup %1824  ;;  %v3017_v26 = vld [vmem:[#allocation52_spill] sm:$0xff] }
 0x2e8   : > { %1397 = vst [vmem:[%s2151_s29 + $0xe0] sm:$0xff] %v1333_v52  ;;  %1398 = vst [vmem:[%s2151_s29 + $0xe8] sm:$0xff] %v1334_v25  ;;  %v1290_v33 = vmul.f32 0.6931472, %v1825_v39  ;;  %v3019_v25 = vld [vmem:[#allocation40_spill] sm:$0xff] }
 0x2e9   : > { %1399 = vst [vmem:[%s2151_s29 + $0xf0] sm:$0xff] %v1335_v16  ;;  %1400 = vst [vmem:[%s2151_s29 + $0xf8] sm:$0xff] %v1336_v5  ;;  %v3020_v16 = vld [vmem:[#allocation44_spill] sm:$0xff] }
 0x2ea   : > { %v1301_v42 = vadd.f32 %v1290_v33, %v2594_v13 }
 0x2eb   : > { %v1271_v60 = vpop.xlane.xlu0 %1270 }
 0x2ec   : > { %v1337_v36 = vsub.f32 %v3004_v31, %v1301_v42  ;;  %v1338_v41 = vsub.f32 %v3005_v4, %v1301_v42  ;;  %v1339_v17 = vsub.f32 %v2367_v50, %v1301_v42  ;;  %v1340_v21 = vsub.f32 %v2398_v29, %v1301_v42 }
 0x2ed   : > { %v1341_v51 = vsub.f32 %v2444_v32, %v1301_v42  ;;  %v1342_v58 = vsub.f32 %v2456_v22, %v1301_v42  ;;  %v1343_v27 = vsub.f32 %v2466_v48, %v1301_v42  ;;  %v1344_v13 = vsub.f32 %v3006_v46, %v1301_v42  ;;  %v3007_v48 = vld [vmem:[#allocation29_spill] sm:$0xff] }
 0x2ee   : > { %1401 = vst [vmem:[%s2151_s29 + $0x100] sm:$0xff] %v1337_v36  ;;  %1402 = vst [vmem:[%s2151_s29 + $0x108] sm:$0xff] %v1338_v41  ;;  %1828 = vlog2.f32 %v1271_v60 }
 0x2ef   : > { %1403 = vst [vmem:[%s2151_s29 + $0x110] sm:$0xff] %v1339_v17  ;;  %1404 = vst [vmem:[%s2151_s29 + $0x118] sm:$0xff] %v1340_v21 }
 0x2f0   : > { %1405 = vst [vmem:[%s2151_s29 + $0x120] sm:$0xff] %v1341_v51  ;;  %1406 = vst [vmem:[%s2151_s29 + $0x128] sm:$0xff] %v1342_v58  ;;  %v1827_v50 = vpop.eup %1826 }
 0x2f1   : > { %1407 = vst [vmem:[%s2151_s29 + $0x130] sm:$0xff] %v1343_v27  ;;  %1408 = vst [vmem:[%s2151_s29 + $0x138] sm:$0xff] %v1344_v13  ;;  %v1292_v29 = vmul.f32 0.6931472, %v1827_v50 }
 0x2f3   : > { %v1302_v32 = vadd.f32 %v1292_v29, %v2612_v45  ;;  %v1280_v22 = vpop.xlane.xlu1 %1279  ;;  %v3013_v45 = vld [vmem:[#allocation51_spill] sm:$0xff] }
 0x2f4   : > { %1830 = vlog2.f32 %v1280_v22 }
 0x2f5   : > { %v1345_v20 = vsub.f32 %v3007_v48, %v1302_v32  ;;  %v1346_v18 = vsub.f32 %v3008_v40, %v1302_v32  ;;  %v1347_v43 = vsub.f32 %v3009_v34, %v1302_v32  ;;  %v1348_v10 = vsub.f32 %v2977_v28, %v1302_v32 }
 0x2f6   : > { %v1349_v12 = vsub.f32 %v3010_v9, %v1302_v32  ;;  %v1350_v24 = vsub.f32 %v3011_v38, %v1302_v32  ;;  %v1351_v15 = vsub.f32 %v3012_v23, %v1302_v32  ;;  %v1352_v7 = vsub.f32 %v3013_v45, %v1302_v32 }
 0x2f7   : > { %1409 = vst [vmem:[%s2151_s29 + $0x140] sm:$0xff] %v1345_v20  ;;  %1410 = vst [vmem:[%s2151_s29 + $0x148] sm:$0xff] %v1346_v18 }
 0x2f8   : > { %1411 = vst [vmem:[%s2151_s29 + $0x150] sm:$0xff] %v1347_v43  ;;  %1412 = vst [vmem:[%s2151_s29 + $0x158] sm:$0xff] %v1348_v10  ;;  %v1829_v47 = vpop.eup %1828 }
 0x2f9   : > { %1413 = vst [vmem:[%s2151_s29 + $0x160] sm:$0xff] %v1349_v12  ;;  %1414 = vst [vmem:[%s2151_s29 + $0x168] sm:$0xff] %v1350_v24  ;;  %v1294_v28 = vmul.f32 0.6931472, %v1829_v47 }
 0x2fa   : > { %1415 = vst [vmem:[%s2151_s29 + $0x170] sm:$0xff] %v1351_v15  ;;  %1416 = vst [vmem:[%s2151_s29 + $0x178] sm:$0xff] %v1352_v7 }
 0x2fb   : > { %v1303_v55 = vadd.f32 %v1294_v28, %v2630_v0 }
 0x2fd   : > { %v1353_v63 = vsub.f32 %v3014_v57, %v1303_v55  ;;  %v1354_v53 = vsub.f32 %v3015_v3, %v1303_v55  ;;  %v1355_v35 = vsub.f32 %v3016_v54, %v1303_v55  ;;  %v1356_v61 = vsub.f32 %v2982_v11, %v1303_v55 }
 0x2fe   : > { %v1357_v14 = vsub.f32 %v2497_v37, %v1303_v55  ;;  %v1358_v56 = vsub.f32 %v2503_v8, %v1303_v55  ;;  %v1359_v49 = vsub.f32 %v3017_v26, %v1303_v55  ;;  %v1360_v52 = vsub.f32 %v2520_v44, %v1303_v55  ;;  %v1831_v0 = vpop.eup %1830  ;;  %v3018_v8 = vld [vmem:[#allocation39_spill] sm:$0xff] }
 0x2ff   : > { %1417 = vst [vmem:[%s2151_s29 + $0x180] sm:$0xff] %v1353_v63  ;;  %1418 = vst [vmem:[%s2151_s29 + $0x188] sm:$0xff] %v1354_v53  ;;  %v1296_v11 = vmul.f32 0.6931472, %v1831_v0 }
 0x300   : > { %1419 = vst [vmem:[%s2151_s29 + $0x190] sm:$0xff] %v1355_v35  ;;  %1420 = vst [vmem:[%s2151_s29 + $0x198] sm:$0xff] %v1356_v61 }
 0x301   : > { %1421 = vst [vmem:[%s2151_s29 + $0x1a0] sm:$0xff] %v1357_v14  ;;  %1422 = vst [vmem:[%s2151_s29 + $0x1a8] sm:$0xff] %v1358_v56  ;;  %v1304_v37 = vadd.f32 %v1296_v11, %v2648_v62 }
 0x302   : > { %1423 = vst [vmem:[%s2151_s29 + $0x1b0] sm:$0xff] %v1359_v49  ;;  %1424 = vst [vmem:[%s2151_s29 + $0x1b8] sm:$0xff] %v1360_v52 }
 0x303   : > { %v1361_v44 = vsub.f32 %v3018_v8, %v1304_v37  ;;  %v1362_v19 = vsub.f32 %v3019_v25, %v1304_v37  ;;  %v1363_v5 = vsub.f32 %v3020_v16, %v1304_v37  ;;  %v1364_v39 = vsub.f32 %v2986_v6, %v1304_v37 }
 0x304   : > { %v1365_v62 = vsub.f32 %v2507_v59, %v1304_v37  ;;  %v1366_v33 = vsub.f32 %v2514_v1, %v1304_v37  ;;  %v1367_v42 = vsub.f32 %v2523_v2, %v1304_v37  ;;  %v1368_v31 = vsub.f32 %v2527_v30, %v1304_v37 }
 0x305   : > { %1425 = vst [vmem:[%s2151_s29 + $0x1c0] sm:$0xff] %v1361_v44  ;;  %1426 = vst [vmem:[%s2151_s29 + $0x1c8] sm:$0xff] %v1362_v19 }
 0x306   : > { %1427 = vst [vmem:[%s2151_s29 + $0x1d0] sm:$0xff] %v1363_v5  ;;  %1428 = vst [vmem:[%s2151_s29 + $0x1d8] sm:$0xff] %v1364_v39 }
 0x307   : > { %1429 = vst [vmem:[%s2151_s29 + $0x1e0] sm:$0xff] %v1365_v62  ;;  %1430 = vst [vmem:[%s2151_s29 + $0x1e8] sm:$0xff] %v1366_v33 }
 0x308   : > { %1431 = vst [vmem:[%s2151_s29 + $0x1f0] sm:$0xff] %v1367_v42  ;;  %1432 = vst [vmem:[%s2151_s29 + $0x1f8] sm:$0xff] %v1368_v31 }
 0x309   : > { %1911 = shalt.err (!%p1908_p0)
}
 0x30a   : > { %s1912_s13 = scalar_lea.hbm %s2805_s0, 8192  ;;  %s1916_s22 = scalar_lea.hbm %s2868_s4, 16384 }
 0x30b   : > { %p1913_p2 = scmp.ne.s32.totalorder %s2805_s0, %s1912_s13  ;;  %p1917_p9 = scmp.lt.u32.totalorder %s2805_s0, %s2868_s4 }
 0x30c   : > { %p1918_p12 = scmp.lt.u32.totalorder %s1916_s22, %s1912_s13  ;;  %p1920_p13 = scmp.lt.u32.totalorder %s1912_s13, %s2805_s0 }
 0x30d   : > { %p1914_p3 = pnand %p1913_p2, %p3021_p4 }
 0x30e   : > { %p1919_p1 = por %p1918_p12, %p1917_p9 }
 0x30f   : > { %p1915_p8 = pneg %p1914_p3 }
 0x310   : > { %p1921_p5 = por %p1920_p13, %p1919_p1 }
 0x312   : > { %p1922_p6 = pnand %p1921_p5, %p1915_p8 }
 0x314   : > { %1925 = shalt.err (!%p1922_p6)
}
 0x315   : > { %s1989_s15 = smov 1024   ;;  %s1990_s10 = smov 64  }
 0x316   : > { %1620 = dma.vmem_to_hbm [thread:$0]  (%p3021_p4), %s2807_s11, 8192, %s2805_s0, %s2823_s17, %s1989_s15, %s1989_s15, %s1990_s10  }
 0x317 PF: > { %p1637_p7 = scmp.ge.s32.totalorder %s1974_s28, 2  ;;  %s1463_s5 = sand.u32 1, %s1962_s25  }
 0x318   : > { %p3022_p10 = scmp.ne.s32.totalorder %s2926_s9, 0  ;;  %s1464_s6 = scalar_lea.sflag [#allocation7], %s1463_s5 }
 0x31a   : > { %p1630_p11 = pnand %p1637_p7, %p3022_p10 }
 0x31c   : > { %1957 = dma.done.wait (!%p1630_p11), %s1464_s6, 8192  }
 0x31d   : > { %1959 = vsyncadd (!%p1630_p11), %s1464_s6, 4294959104  ;;  %p20_p0 = scmp.ge.s32.totalorder %s2053_s30, 4   ;;  %s3023_s25 = smov %s1966_s26 }
 0x31e   : > { %s3024_s26 = smov %s1970_s27  ;;  %s3025_s27 = smov %s2064_s7 }
 0x31f   : > { %s3026_s28 = smov %s2053_s30  ;;  %22 = sbr.rel (!%p20_p0) target bundleno = 17 (0x11), region = 96 }
 0x326   :  { %1469 = vsyncpa [#allocation6], 1 }
 0x327   :  { %1471 = vsyncpa [#allocation6 + $0x1], 1 }
 0x328   :  { %1472 = vsyncpa [#allocation9], 1 }
 0x329   :  { %1473 = vsyncpa [#allocation7], 1 }
 0x32a   :  { %1475 = vsyncpa [#allocation7 + $0x1], 1 }

</bundles_post_ra>
